<compile_context>
chip_gen: v7x
topology: tpu7x:2x2x1
jax: 0.10.0
libtpu: 0.0.40
codegen_flags: <defaults>
</compile_context>

<pallas_src>
import functools

import jax
import jax.numpy as jnp
from jax.experimental import pallas as pl
from jax.experimental.pallas import tpu as pltpu


def _layernorm(v, g, b, eps=1e-5):
    # LayerNorm subclass in the reference casts to fp32 internally; activations
    # here are already fp32.
    v32 = v.astype(jnp.float32)
    mu = jnp.mean(v32, axis=-1, keepdims=True)
    var = jnp.mean((v32 - mu) ** 2, axis=-1, keepdims=True)
    return (v32 - mu) * jax.lax.rsqrt(var + eps) * g + b


def resblocks_kernel(x_ref,
                     ln1_g, ln1_b,
                     wq, wk, wv, bq, bk, bv,
                     wo, bo,
                     ln2_g, ln2_b,
                     wfc, bfc, wpr, bpr,
                     o_ref,
                     xact,
                     *, n_heads):
    """One grid step == one ResidualAttentionBlock applied to the resident
    activation `xact` (shape (B*S, D), f32), with this layer's weights."""
    layer = pl.program_id(0)
    n_layers = pl.num_programs(0)
    B, S, D = x_ref.shape
    hd = D // n_heads

    @pl.when(layer == 0)
    def _():
        xact[...] = x_ref[...].reshape(B * S, D).astype(jnp.float32)

    x2 = xact[...]                                            # (B*S, D) f32

    # ---------------- attention branch: x + attn(ln_1(x)) ----------------
    h = _layernorm(x2, ln1_g[...], ln1_b[...])                # f32
    h16 = h.astype(jnp.bfloat16)
    # 1/sqrt(hd) is pre-folded into wq / bq (see prepare_params).
    q = jnp.dot(h16, wq[...], preferred_element_type=jnp.float32) + bq[...]
    k = jnp.dot(h16, wk[...], preferred_element_type=jnp.float32) + bk[...]
    v = jnp.dot(h16, wv[...], preferred_element_type=jnp.float32) + bv[...]

    heads_out = []
    for hh in range(n_heads):                                 # small static loop
        sl = slice(hh * hd, (hh + 1) * hd)
        qh = q[:, sl].reshape(B, S, hd)                       # pure reshape, no transpose
        kh = k[:, sl].reshape(B, S, hd)
        vh = v[:, sl].reshape(B, S, hd)
        scores = jnp.einsum('bqd,bkd->bqk', qh, kh,
                            preferred_element_type=jnp.float32)   # (B, S, S)
        m = jnp.max(scores, axis=-1, keepdims=True)
        e = jnp.exp(scores - m)
        p = e * pl.reciprocal(jnp.sum(e, axis=-1, keepdims=True), approx=True)
        heads_out.append(jnp.einsum('bqk,bkd->bqd', p, vh,
                                    preferred_element_type=jnp.float32))  # (B, S, hd)
    attn = jnp.concatenate(heads_out, axis=-1).reshape(B * S, D)   # lane-dense (D cols)
    attn = jnp.dot(attn.astype(jnp.bfloat16), wo[...],
                   preferred_element_type=jnp.float32) + bo[...]
    x2 = x2 + attn

    # ------------- MLP branch: x + c_proj(gelu(c_fc(ln_2(x)))) -------------
    h2 = _layernorm(x2, ln2_g[...], ln2_b[...])
    mlp = jnp.dot(h2.astype(jnp.bfloat16), wfc[...],
                  preferred_element_type=jnp.float32) + bfc[...]
    mlp = mlp * jax.nn.sigmoid(1.702 * mlp)                   # QuickGELU
    mlp = jnp.dot(mlp.astype(jnp.bfloat16), wpr[...],
                  preferred_element_type=jnp.float32) + bpr[...]
    x2 = x2 + mlp

    xact[...] = x2

    @pl.when(layer == n_layers - 1)
    def _():
        o_ref[...] = x2.reshape(B, S, D).astype(o_ref.dtype)


def temporal_modelling(x_sbd, stacked_params, n_heads):
    """Applies `layers` residual attention blocks; x is (S, B, D)."""
    S, B, D = x_sbd.shape
    L = stacked_params[0].shape[0]

    # Relayout once outside the kernel so in-kernel attention is batch-leading.
    x_bsd = jnp.transpose(x_sbd, (1, 0, 2))                   # (B, S, D)

    kernel = functools.partial(resblocks_kernel, n_heads=n_heads)
    in_specs = [pl.BlockSpec((B, S, D), lambda l: (0, 0, 0))] + [
        pl.BlockSpec((None,) + p.shape[1:], lambda l: (l, 0, 0))
        for p in stacked_params
    ]
    grid_spec = pltpu.PrefetchScalarGridSpec(
        num_scalar_prefetch=0,
        grid=(L,),
        in_specs=in_specs,
        out_specs=pl.BlockSpec((B, S, D), lambda l: (0, 0, 0)),
        scratch_shapes=[pltpu.VMEM((B * S, D), jnp.float32)],
    )
    out_bsd = pl.pallas_call(
        kernel,
        out_shape=jax.ShapeDtypeStruct((B, S, D), x_sbd.dtype),
        grid_spec=grid_spec,
        compiler_params=pltpu.CompilerParams(
            dimension_semantics=("arbitrary",),        # layers are sequential
            vmem_limit_bytes=48 * 1024 * 1024,         # headroom on v5e, fits v7x
        ),
    )(x_bsd, *stacked_params)
    # TODO(synk): on v7x, once weight-pipelined & compute-bound, shard a batch
    # grid axis 'parallel' across the 2 TensorCores.
    return jnp.transpose(out_bsd, (1, 0, 2))                  # back to (S, B, D)


def init_params(key, width, layers):
    """Deterministic synthetic per-layer parameters (PyTorch-shaped, linear
    weights pre-transposed to (in_features, out_features))."""
    D = width
    params = []
    for layer in range(layers):
        ks = jax.random.split(jax.random.fold_in(key, layer), 10)
        s = 0.02
        ln1_g = jnp.ones((1, D), jnp.float32)
        ln1_b = jnp.zeros((1, D), jnp.float32)
        wq = jax.random.normal(ks[0], (D, D), jnp.float32) * s
        wk = jax.random.normal(ks[1], (D, D), jnp.float32) * s
        wv = jax.random.normal(ks[2], (D, D), jnp.float32) * s
        bq = jax.random.normal(ks[3], (1, D), jnp.float32) * s
        bk = jax.random.normal(ks[4], (1, D), jnp.float32) * s
        bv = jax.random.normal(ks[5], (1, D), jnp.float32) * s
        wo = jax.random.normal(ks[6], (D, D), jnp.float32) * s
        bo = jnp.zeros((1, D), jnp.float32)
        ln2_g = jnp.ones((1, D), jnp.float32)
        ln2_b = jnp.zeros((1, D), jnp.float32)
        wfc = jax.random.normal(ks[7], (D, 4 * D), jnp.float32) * s
        bfc = jax.random.normal(ks[8], (1, 4 * D), jnp.float32) * s
        wpr = jax.random.normal(ks[9], (4 * D, D), jnp.float32) * s
        bpr = jnp.zeros((1, D), jnp.float32)
        params.append((ln1_g, ln1_b, wq, wk, wv, bq, bk, bv, wo, bo,
                       ln2_g, ln2_b, wfc, bfc, wpr, bpr))
    return params


def prepare_params(params, n_heads):
    """Stack per-layer params along a leading `layers` axis, fold 1/sqrt(hd)
    into wq/bq, and cast the large matmul weights to bf16."""
    D = params[0][2].shape[0]
    hd = D // n_heads
    scale = 1.0 / float(hd) ** 0.5
    bf16_weight_idx = {2, 3, 4, 8, 12, 14}      # wq, wk, wv, wo, wfc, wpr
    scaled_idx = {2, 5}                         # wq, bq
    stacked = []
    for i in range(len(params[0])):
        arrs = [p[i] for p in params]
        if i in scaled_idx:
            arrs = [a * scale for a in arrs]
        stk = jnp.stack(arrs, axis=0)
        if i in bf16_weight_idx:
            stk = stk.astype(jnp.bfloat16)
        stacked.append(stk)
    return tuple(stacked)


if __name__ == "__main__":
    key = jax.random.PRNGKey(0)
    S, B, width, heads, layers = 8, 2, 32, 4, 2   # (seq, batch, d_model)
    kx, kp = jax.random.split(key)
    x = jax.random.normal(kx, (S, B, width), jnp.float32)
    params = init_params(kp, width, layers)
    stacked = prepare_params(params, heads)

    out = temporal_modelling(x, stacked, heads)
    out = jax.block_until_ready(out)
    assert out.shape == (S, B, width) and out.dtype == jnp.float32
    assert bool(jnp.all(jnp.isfinite(out)))
    print("KERNEL_OK")
</pallas_src>

<mosaic_0001>
module attributes {stable_mosaic.version = 11 : i64} {
  func.func @resblocks_kernel(%arg0: i32, %arg1: memref<2x8x32xf32, #tpu.memory_space<vmem>>, %arg2: memref<1x1x32xf32, #tpu.memory_space<vmem>>, %arg3: memref<1x1x32xf32, #tpu.memory_space<vmem>>, %arg4: memref<1x32x32xbf16, #tpu.memory_space<vmem>>, %arg5: memref<1x32x32xbf16, #tpu.memory_space<vmem>>, %arg6: memref<1x32x32xbf16, #tpu.memory_space<vmem>>, %arg7: memref<1x1x32xf32, #tpu.memory_space<vmem>>, %arg8: memref<1x1x32xf32, #tpu.memory_space<vmem>>, %arg9: memref<1x1x32xf32, #tpu.memory_space<vmem>>, %arg10: memref<1x32x32xbf16, #tpu.memory_space<vmem>>, %arg11: memref<1x1x32xf32, #tpu.memory_space<vmem>>, %arg12: memref<1x1x32xf32, #tpu.memory_space<vmem>>, %arg13: memref<1x1x32xf32, #tpu.memory_space<vmem>>, %arg14: memref<1x32x128xbf16, #tpu.memory_space<vmem>>, %arg15: memref<1x1x128xf32, #tpu.memory_space<vmem>>, %arg16: memref<1x128x32xbf16, #tpu.memory_space<vmem>>, %arg17: memref<1x1x32xf32, #tpu.memory_space<vmem>>, %arg18: memref<2x8x32xf32, #tpu.memory_space<vmem>>, %arg19: memref<16x32xf32, #tpu.memory_space<vmem>>) attributes {dimension_semantics = [#tpu.dimension_semantics<arbitrary>], iteration_bounds = array<i64: 2>, scalar_prefetch = 0 : i64, scratch_operands = 1 : i64, tpu.core_type = #tpu.core_type<tc>, window_params = [{pipeline_mode = #tpu.pipeline_mode<synchronous>, transform_indices = @transform_0, window_bounds = array<i64: 2, 8, 32>}, {transform_indices = @transform_1, window_bounds = array<i64: 1, 1, 32>}, {transform_indices = @transform_2, window_bounds = array<i64: 1, 1, 32>}, {transform_indices = @transform_3, window_bounds = array<i64: 1, 32, 32>}, {transform_indices = @transform_4, window_bounds = array<i64: 1, 32, 32>}, {transform_indices = @transform_5, window_bounds = array<i64: 1, 32, 32>}, {transform_indices = @transform_6, window_bounds = array<i64: 1, 1, 32>}, {transform_indices = @transform_7, window_bounds = array<i64: 1, 1, 32>}, {transform_indices = @transform_8, window_bounds = array<i64: 1, 1, 32>}, {transform_indices = @transform_9, window_bounds = array<i64: 1, 32, 32>}, {transform_indices = @transform_10, window_bounds = array<i64: 1, 1, 32>}, {transform_indices = @transform_11, window_bounds = array<i64: 1, 1, 32>}, {transform_indices = @transform_12, window_bounds = array<i64: 1, 1, 32>}, {transform_indices = @transform_13, window_bounds = array<i64: 1, 32, 128>}, {transform_indices = @transform_14, window_bounds = array<i64: 1, 1, 128>}, {transform_indices = @transform_15, window_bounds = array<i64: 1, 128, 32>}, {transform_indices = @transform_16, window_bounds = array<i64: 1, 1, 32>}, {pipeline_mode = #tpu.pipeline_mode<synchronous>, transform_indices = @transform_17, window_bounds = array<i64: 2, 8, 32>}]} {
    %c0_i32 = arith.constant 0 : i32
    %0 = arith.cmpi eq, %arg0, %c0_i32 : i32
    %1 = arith.extui %0 : i1 to i32
    %c0_i32_0 = arith.constant 0 : i32
    %2 = arith.cmpi ne, %1, %c0_i32_0 : i32
    scf.if %2 {
      %c0_86 = arith.constant 0 : index
      %c0_87 = arith.constant 0 : index
      %c0_88 = arith.constant 0 : index
      %190 = vector.load %arg1[%c0_86, %c0_87, %c0_88] : memref<2x8x32xf32, #tpu.memory_space<vmem>>, vector<2x8x32xf32>
      %191 = vector.shape_cast %190 : vector<2x8x32xf32> to vector<16x32xf32>
      %c0_89 = arith.constant 0 : index
      %c0_90 = arith.constant 0 : index
      %192 = vector.load %arg19[%c0_89, %c0_90] : memref<16x32xf32, #tpu.memory_space<vmem>>, vector<16x32xf32>
      tpu.vector_store %arg19[%c0_89, %c0_90], %191 {strides = array<i32>} : memref<16x32xf32, #tpu.memory_space<vmem>>, vector<16x32xf32>,
    } else {
    }
    %c0 = arith.constant 0 : index
    %c0_1 = arith.constant 0 : index
    %3 = vector.load %arg19[%c0, %c0_1] : memref<16x32xf32, #tpu.memory_space<vmem>>, vector<16x32xf32>
    %c0_2 = arith.constant 0 : index
    %c0_3 = arith.constant 0 : index
    %c0_4 = arith.constant 0 : index
    %4 = vector.load %arg2[%c0_2, %c0_3, %c0_4] : memref<1x1x32xf32, #tpu.memory_space<vmem>>, vector<1x1x32xf32>
    %5 = vector.shape_cast %4 : vector<1x1x32xf32> to vector<1x32xf32>
    %c0_5 = arith.constant 0 : index
    %c0_6 = arith.constant 0 : index
    %c0_7 = arith.constant 0 : index
    %6 = vector.load %arg3[%c0_5, %c0_6, %c0_7] : memref<1x1x32xf32, #tpu.memory_space<vmem>>, vector<1x1x32xf32>
    %7 = vector.shape_cast %6 : vector<1x1x32xf32> to vector<1x32xf32>
    %cst = arith.constant dense<0.000000e+00> : vector<16xf32>
    %8 = vector.multi_reduction <add>, %3, %cst [1] : vector<16x32xf32> to vector<16xf32>
    %9 = vector.shape_cast %8 : vector<16xf32> to vector<16x1xf32>
    %cst_8 = arith.constant 3.200000e+01 : f32
    %10 = vector.broadcast %cst_8 : f32 to vector<16x1xf32>
    %11 = arith.divf %9, %10 : vector<16x1xf32>
    %12 = vector.broadcast %11 : vector<16x1xf32> to vector<16x32xf32>
    %13 = arith.subf %3, %12 : vector<16x32xf32>
    %14 = arith.mulf %13, %13 : vector<16x32xf32>
    %cst_9 = arith.constant dense<0.000000e+00> : vector<16xf32>
    %15 = vector.multi_reduction <add>, %14, %cst_9 [1] : vector<16x32xf32> to vector<16xf32>
    %16 = vector.shape_cast %15 : vector<16xf32> to vector<16x1xf32>
    %cst_10 = arith.constant 3.200000e+01 : f32
    %17 = vector.broadcast %cst_10 : f32 to vector<16x1xf32>
    %18 = arith.divf %16, %17 : vector<16x1xf32>
    %19 = vector.broadcast %11 : vector<16x1xf32> to vector<16x32xf32>
    %20 = arith.subf %3, %19 : vector<16x32xf32>
    %cst_11 = arith.constant 9.99999974E-6 : f32
    %21 = vector.broadcast %cst_11 : f32 to vector<16x1xf32>
    %22 = arith.addf %18, %21 : vector<16x1xf32>
    %23 = math.rsqrt %22 : vector<16x1xf32>
    %24 = vector.broadcast %23 : vector<16x1xf32> to vector<16x32xf32>
    %25 = arith.mulf %20, %24 : vector<16x32xf32>
    %26 = vector.broadcast %5 : vector<1x32xf32> to vector<16x32xf32>
    %27 = arith.mulf %25, %26 : vector<16x32xf32>
    %28 = vector.broadcast %7 : vector<1x32xf32> to vector<16x32xf32>
    %29 = arith.addf %27, %28 : vector<16x32xf32>
    %30 = arith.truncf %29 : vector<16x32xf32> to vector<16x32xbf16>
    %c0_12 = arith.constant 0 : index
    %c0_13 = arith.constant 0 : index
    %c0_14 = arith.constant 0 : index
    %31 = vector.load %arg4[%c0_12, %c0_13, %c0_14] : memref<1x32x32xbf16, #tpu.memory_space<vmem>>, vector<1x32x32xbf16>
    %32 = vector.shape_cast %31 : vector<1x32x32xbf16> to vector<32x32xbf16>
    %cst_15 = arith.constant dense<0.000000e+00> : vector<16x32xf32>
    %33 = tpu.matmul %30, %32, %cst_15 {dimension_numbers = #tpu.dot_dimension_numbers<[1], [0], [0], [1], [0, 0, 1, 1], [], []>} : vector<16x32xbf16>, vector<32x32xbf16>, vector<16x32xf32> -> vector<16x32xf32>
    %c0_16 = arith.constant 0 : index
    %c0_17 = arith.constant 0 : index
    %c0_18 = arith.constant 0 : index
    %34 = vector.load %arg7[%c0_16, %c0_17, %c0_18] : memref<1x1x32xf32, #tpu.memory_space<vmem>>, vector<1x1x32xf32>
    %35 = vector.shape_cast %34 : vector<1x1x32xf32> to vector<1x32xf32>
    %36 = vector.broadcast %35 : vector<1x32xf32> to vector<16x32xf32>
    %37 = arith.addf %33, %36 : vector<16x32xf32>
    %c0_19 = arith.constant 0 : index
    %c0_20 = arith.constant 0 : index
    %c0_21 = arith.constant 0 : index
    %38 = vector.load %arg5[%c0_19, %c0_20, %c0_21] : memref<1x32x32xbf16, #tpu.memory_space<vmem>>, vector<1x32x32xbf16>
    %39 = vector.shape_cast %38 : vector<1x32x32xbf16> to vector<32x32xbf16>
    %cst_22 = arith.constant dense<0.000000e+00> : vector<16x32xf32>
    %40 = tpu.matmul %30, %39, %cst_22 {dimension_numbers = #tpu.dot_dimension_numbers<[1], [0], [0], [1], [0, 0, 1, 1], [], []>} : vector<16x32xbf16>, vector<32x32xbf16>, vector<16x32xf32> -> vector<16x32xf32>
    %c0_23 = arith.constant 0 : index
    %c0_24 = arith.constant 0 : index
    %c0_25 = arith.constant 0 : index
    %41 = vector.load %arg8[%c0_23, %c0_24, %c0_25] : memref<1x1x32xf32, #tpu.memory_space<vmem>>, vector<1x1x32xf32>
    %42 = vector.shape_cast %41 : vector<1x1x32xf32> to vector<1x32xf32>
    %43 = vector.broadcast %42 : vector<1x32xf32> to vector<16x32xf32>
    %44 = arith.addf %40, %43 : vector<16x32xf32>
    %c0_26 = arith.constant 0 : index
    %c0_27 = arith.constant 0 : index
    %c0_28 = arith.constant 0 : index
    %45 = vector.load %arg6[%c0_26, %c0_27, %c0_28] : memref<1x32x32xbf16, #tpu.memory_space<vmem>>, vector<1x32x32xbf16>
    %46 = vector.shape_cast %45 : vector<1x32x32xbf16> to vector<32x32xbf16>
    %cst_29 = arith.constant dense<0.000000e+00> : vector<16x32xf32>
    %47 = tpu.matmul %30, %46, %cst_29 {dimension_numbers = #tpu.dot_dimension_numbers<[1], [0], [0], [1], [0, 0, 1, 1], [], []>} : vector<16x32xbf16>, vector<32x32xbf16>, vector<16x32xf32> -> vector<16x32xf32>
    %c0_30 = arith.constant 0 : index
    %c0_31 = arith.constant 0 : index
    %c0_32 = arith.constant 0 : index
    %48 = vector.load %arg9[%c0_30, %c0_31, %c0_32] : memref<1x1x32xf32, #tpu.memory_space<vmem>>, vector<1x1x32xf32>
    %49 = vector.shape_cast %48 : vector<1x1x32xf32> to vector<1x32xf32>
    %50 = vector.broadcast %49 : vector<1x32xf32> to vector<16x32xf32>
    %51 = arith.addf %47, %50 : vector<16x32xf32>
    %52 = vector.extract_strided_slice %37 {offsets = [0, 0], sizes = [16, 8], strides = [1, 1]} : vector<16x32xf32> to vector<16x8xf32>
    %53 = vector.shape_cast %52 : vector<16x8xf32> to vector<2x8x8xf32>
    %54 = vector.extract_strided_slice %44 {offsets = [0, 0], sizes = [16, 8], strides = [1, 1]} : vector<16x32xf32> to vector<16x8xf32>
    %55 = vector.shape_cast %54 : vector<16x8xf32> to vector<2x8x8xf32>
    %56 = vector.extract_strided_slice %51 {offsets = [0, 0], sizes = [16, 8], strides = [1, 1]} : vector<16x32xf32> to vector<16x8xf32>
    %57 = vector.shape_cast %56 : vector<16x8xf32> to vector<2x8x8xf32>
    "tpu.trace_start"() <{level = 10 : i32, message = "bqd,bkd->bqk"}> : () -> ()
    %cst_33 = arith.constant dense<0.000000e+00> : vector<2x8x8xf32>
    %58 = tpu.matmul %53, %55, %cst_33 {dimension_numbers = #tpu.dot_dimension_numbers<[2], [2], [1], [1], [0, 0, 0, 1, 1, 1], [0], [0]>} : vector<2x8x8xf32>, vector<2x8x8xf32>, vector<2x8x8xf32> -> vector<2x8x8xf32>
    "tpu.trace_stop"() : () -> ()
    %cst_34 = arith.constant dense<0xFF800000> : vector<2x8xf32>
    %59 = vector.multi_reduction <maximumf>, %58, %cst_34 [2] : vector<2x8x8xf32> to vector<2x8xf32>
    %60 = vector.shape_cast %59 : vector<2x8xf32> to vector<2x8x1xf32>
    %61 = vector.broadcast %60 : vector<2x8x1xf32> to vector<2x8x8xf32>
    %62 = arith.subf %58, %61 : vector<2x8x8xf32>
    %63 = math.exp %62 : vector<2x8x8xf32>
    %cst_35 = arith.constant dense<0.000000e+00> : vector<2x8xf32>
    %64 = vector.multi_reduction <add>, %63, %cst_35 [2] : vector<2x8x8xf32> to vector<2x8xf32>
    %65 = vector.shape_cast %64 : vector<2x8xf32> to vector<2x8x1xf32>
    %66 = tpu.reciprocal %65 {approx = true} : vector<2x8x1xf32> -> vector<2x8x1xf32>
    %67 = vector.broadcast %66 : vector<2x8x1xf32> to vector<2x8x8xf32>
    %68 = arith.mulf %63, %67 : vector<2x8x8xf32>
    "tpu.trace_start"() <{level = 10 : i32, message = "bqk,bkd->bqd"}> : () -> ()
    %cst_36 = arith.constant dense<0.000000e+00> : vector<2x8x8xf32>
    %69 = tpu.matmul %68, %57, %cst_36 {dimension_numbers = #tpu.dot_dimension_numbers<[2], [1], [1], [2], [0, 0, 0, 1, 1, 2], [0], [0]>} : vector<2x8x8xf32>, vector<2x8x8xf32>, vector<2x8x8xf32> -> vector<2x8x8xf32>
    "tpu.trace_stop"() : () -> ()
    %70 = vector.extract_strided_slice %37 {offsets = [0, 8], sizes = [16, 8], strides = [1, 1]} : vector<16x32xf32> to vector<16x8xf32>
    %71 = vector.shape_cast %70 : vector<16x8xf32> to vector<2x8x8xf32>
    %72 = vector.extract_strided_slice %44 {offsets = [0, 8], sizes = [16, 8], strides = [1, 1]} : vector<16x32xf32> to vector<16x8xf32>
    %73 = vector.shape_cast %72 : vector<16x8xf32> to vector<2x8x8xf32>
    %74 = vector.extract_strided_slice %51 {offsets = [0, 8], sizes = [16, 8], strides = [1, 1]} : vector<16x32xf32> to vector<16x8xf32>
    %75 = vector.shape_cast %74 : vector<16x8xf32> to vector<2x8x8xf32>
    "tpu.trace_start"() <{level = 10 : i32, message = "bqd,bkd->bqk"}> : () -> ()
    %cst_37 = arith.constant dense<0.000000e+00> : vector<2x8x8xf32>
    %76 = tpu.matmul %71, %73, %cst_37 {dimension_numbers = #tpu.dot_dimension_numbers<[2], [2], [1], [1], [0, 0, 0, 1, 1, 1], [0], [0]>} : vector<2x8x8xf32>, vector<2x8x8xf32>, vector<2x8x8xf32> -> vector<2x8x8xf32>
    "tpu.trace_stop"() : () -> ()
    %cst_38 = arith.constant dense<0xFF800000> : vector<2x8xf32>
    %77 = vector.multi_reduction <maximumf>, %76, %cst_38 [2] : vector<2x8x8xf32> to vector<2x8xf32>
    %78 = vector.shape_cast %77 : vector<2x8xf32> to vector<2x8x1xf32>
    %79 = vector.broadcast %78 : vector<2x8x1xf32> to vector<2x8x8xf32>
    %80 = arith.subf %76, %79 : vector<2x8x8xf32>
    %81 = math.exp %80 : vector<2x8x8xf32>
    %cst_39 = arith.constant dense<0.000000e+00> : vector<2x8xf32>
    %82 = vector.multi_reduction <add>, %81, %cst_39 [2] : vector<2x8x8xf32> to vector<2x8xf32>
    %83 = vector.shape_cast %82 : vector<2x8xf32> to vector<2x8x1xf32>
    %84 = tpu.reciprocal %83 {approx = true} : vector<2x8x1xf32> -> vector<2x8x1xf32>
    %85 = vector.broadcast %84 : vector<2x8x1xf32> to vector<2x8x8xf32>
    %86 = arith.mulf %81, %85 : vector<2x8x8xf32>
    "tpu.trace_start"() <{level = 10 : i32, message = "bqk,bkd->bqd"}> : () -> ()
    %cst_40 = arith.constant dense<0.000000e+00> : vector<2x8x8xf32>
    %87 = tpu.matmul %86, %75, %cst_40 {dimension_numbers = #tpu.dot_dimension_numbers<[2], [1], [1], [2], [0, 0, 0, 1, 1, 2], [0], [0]>} : vector<2x8x8xf32>, vector<2x8x8xf32>, vector<2x8x8xf32> -> vector<2x8x8xf32>
    "tpu.trace_stop"() : () -> ()
    %88 = vector.extract_strided_slice %37 {offsets = [0, 16], sizes = [16, 8], strides = [1, 1]} : vector<16x32xf32> to vector<16x8xf32>
    %89 = vector.shape_cast %88 : vector<16x8xf32> to vector<2x8x8xf32>
    %90 = vector.extract_strided_slice %44 {offsets = [0, 16], sizes = [16, 8], strides = [1, 1]} : vector<16x32xf32> to vector<16x8xf32>
    %91 = vector.shape_cast %90 : vector<16x8xf32> to vector<2x8x8xf32>
    %92 = vector.extract_strided_slice %51 {offsets = [0, 16], sizes = [16, 8], strides = [1, 1]} : vector<16x32xf32> to vector<16x8xf32>
    %93 = vector.shape_cast %92 : vector<16x8xf32> to vector<2x8x8xf32>
    "tpu.trace_start"() <{level = 10 : i32, message = "bqd,bkd->bqk"}> : () -> ()
    %cst_41 = arith.constant dense<0.000000e+00> : vector<2x8x8xf32>
    %94 = tpu.matmul %89, %91, %cst_41 {dimension_numbers = #tpu.dot_dimension_numbers<[2], [2], [1], [1], [0, 0, 0, 1, 1, 1], [0], [0]>} : vector<2x8x8xf32>, vector<2x8x8xf32>, vector<2x8x8xf32> -> vector<2x8x8xf32>
    "tpu.trace_stop"() : () -> ()
    %cst_42 = arith.constant dense<0xFF800000> : vector<2x8xf32>
    %95 = vector.multi_reduction <maximumf>, %94, %cst_42 [2] : vector<2x8x8xf32> to vector<2x8xf32>
    %96 = vector.shape_cast %95 : vector<2x8xf32> to vector<2x8x1xf32>
    %97 = vector.broadcast %96 : vector<2x8x1xf32> to vector<2x8x8xf32>
    %98 = arith.subf %94, %97 : vector<2x8x8xf32>
    %99 = math.exp %98 : vector<2x8x8xf32>
    %cst_43 = arith.constant dense<0.000000e+00> : vector<2x8xf32>
    %100 = vector.multi_reduction <add>, %99, %cst_43 [2] : vector<2x8x8xf32> to vector<2x8xf32>
    %101 = vector.shape_cast %100 : vector<2x8xf32> to vector<2x8x1xf32>
    %102 = tpu.reciprocal %101 {approx = true} : vector<2x8x1xf32> -> vector<2x8x1xf32>
    %103 = vector.broadcast %102 : vector<2x8x1xf32> to vector<2x8x8xf32>
    %104 = arith.mulf %99, %103 : vector<2x8x8xf32>
    "tpu.trace_start"() <{level = 10 : i32, message = "bqk,bkd->bqd"}> : () -> ()
    %cst_44 = arith.constant dense<0.000000e+00> : vector<2x8x8xf32>
    %105 = tpu.matmul %104, %93, %cst_44 {dimension_numbers = #tpu.dot_dimension_numbers<[2], [1], [1], [2], [0, 0, 0, 1, 1, 2], [0], [0]>} : vector<2x8x8xf32>, vector<2x8x8xf32>, vector<2x8x8xf32> -> vector<2x8x8xf32>
    "tpu.trace_stop"() : () -> ()
    %106 = vector.extract_strided_slice %37 {offsets = [0, 24], sizes = [16, 8], strides = [1, 1]} : vector<16x32xf32> to vector<16x8xf32>
    %107 = vector.shape_cast %106 : vector<16x8xf32> to vector<2x8x8xf32>
    %108 = vector.extract_strided_slice %44 {offsets = [0, 24], sizes = [16, 8], strides = [1, 1]} : vector<16x32xf32> to vector<16x8xf32>
    %109 = vector.shape_cast %108 : vector<16x8xf32> to vector<2x8x8xf32>
    %110 = vector.extract_strided_slice %51 {offsets = [0, 24], sizes = [16, 8], strides = [1, 1]} : vector<16x32xf32> to vector<16x8xf32>
    %111 = vector.shape_cast %110 : vector<16x8xf32> to vector<2x8x8xf32>
    "tpu.trace_start"() <{level = 10 : i32, message = "bqd,bkd->bqk"}> : () -> ()
    %cst_45 = arith.constant dense<0.000000e+00> : vector<2x8x8xf32>
    %112 = tpu.matmul %107, %109, %cst_45 {dimension_numbers = #tpu.dot_dimension_numbers<[2], [2], [1], [1], [0, 0, 0, 1, 1, 1], [0], [0]>} : vector<2x8x8xf32>, vector<2x8x8xf32>, vector<2x8x8xf32> -> vector<2x8x8xf32>
    "tpu.trace_stop"() : () -> ()
    %cst_46 = arith.constant dense<0xFF800000> : vector<2x8xf32>
    %113 = vector.multi_reduction <maximumf>, %112, %cst_46 [2] : vector<2x8x8xf32> to vector<2x8xf32>
    %114 = vector.shape_cast %113 : vector<2x8xf32> to vector<2x8x1xf32>
    %115 = vector.broadcast %114 : vector<2x8x1xf32> to vector<2x8x8xf32>
    %116 = arith.subf %112, %115 : vector<2x8x8xf32>
    %117 = math.exp %116 : vector<2x8x8xf32>
    %cst_47 = arith.constant dense<0.000000e+00> : vector<2x8xf32>
    %118 = vector.multi_reduction <add>, %117, %cst_47 [2] : vector<2x8x8xf32> to vector<2x8xf32>
    %119 = vector.shape_cast %118 : vector<2x8xf32> to vector<2x8x1xf32>
    %120 = tpu.reciprocal %119 {approx = true} : vector<2x8x1xf32> -> vector<2x8x1xf32>
    %121 = vector.broadcast %120 : vector<2x8x1xf32> to vector<2x8x8xf32>
    %122 = arith.mulf %117, %121 : vector<2x8x8xf32>
    "tpu.trace_start"() <{level = 10 : i32, message = "bqk,bkd->bqd"}> : () -> ()
    %cst_48 = arith.constant dense<0.000000e+00> : vector<2x8x8xf32>
    %123 = tpu.matmul %122, %111, %cst_48 {dimension_numbers = #tpu.dot_dimension_numbers<[2], [1], [1], [2], [0, 0, 0, 1, 1, 2], [0], [0]>} : vector<2x8x8xf32>, vector<2x8x8xf32>, vector<2x8x8xf32> -> vector<2x8x8xf32>
    "tpu.trace_stop"() : () -> ()
    %124 = tpu.concatenate %69, %87, %105, %123 in 2 : vector<2x8x8xf32>, vector<2x8x8xf32>, vector<2x8x8xf32>, vector<2x8x8xf32> -> vector<2x8x32xf32>
    %125 = vector.shape_cast %124 : vector<2x8x32xf32> to vector<16x32xf32>
    %126 = arith.truncf %125 : vector<16x32xf32> to vector<16x32xbf16>
    %c0_49 = arith.constant 0 : index
    %c0_50 = arith.constant 0 : index
    %c0_51 = arith.constant 0 : index
    %127 = vector.load %arg10[%c0_49, %c0_50, %c0_51] : memref<1x32x32xbf16, #tpu.memory_space<vmem>>, vector<1x32x32xbf16>
    %128 = vector.shape_cast %127 : vector<1x32x32xbf16> to vector<32x32xbf16>
    %cst_52 = arith.constant dense<0.000000e+00> : vector<16x32xf32>
    %129 = tpu.matmul %126, %128, %cst_52 {dimension_numbers = #tpu.dot_dimension_numbers<[1], [0], [0], [1], [0, 0, 1, 1], [], []>} : vector<16x32xbf16>, vector<32x32xbf16>, vector<16x32xf32> -> vector<16x32xf32>
    %c0_53 = arith.constant 0 : index
    %c0_54 = arith.constant 0 : index
    %c0_55 = arith.constant 0 : index
    %130 = vector.load %arg11[%c0_53, %c0_54, %c0_55] : memref<1x1x32xf32, #tpu.memory_space<vmem>>, vector<1x1x32xf32>
    %131 = vector.shape_cast %130 : vector<1x1x32xf32> to vector<1x32xf32>
    %132 = vector.broadcast %131 : vector<1x32xf32> to vector<16x32xf32>
    %133 = arith.addf %129, %132 : vector<16x32xf32>
    %134 = arith.addf %3, %133 : vector<16x32xf32>
    %c0_56 = arith.constant 0 : index
    %c0_57 = arith.constant 0 : index
    %c0_58 = arith.constant 0 : index
    %135 = vector.load %arg12[%c0_56, %c0_57, %c0_58] : memref<1x1x32xf32, #tpu.memory_space<vmem>>, vector<1x1x32xf32>
    %136 = vector.shape_cast %135 : vector<1x1x32xf32> to vector<1x32xf32>
    %c0_59 = arith.constant 0 : index
    %c0_60 = arith.constant 0 : index
    %c0_61 = arith.constant 0 : index
    %137 = vector.load %arg13[%c0_59, %c0_60, %c0_61] : memref<1x1x32xf32, #tpu.memory_space<vmem>>, vector<1x1x32xf32>
    %138 = vector.shape_cast %137 : vector<1x1x32xf32> to vector<1x32xf32>
    %cst_62 = arith.constant dense<0.000000e+00> : vector<16xf32>
    %139 = vector.multi_reduction <add>, %134, %cst_62 [1] : vector<16x32xf32> to vector<16xf32>
    %140 = vector.shape_cast %139 : vector<16xf32> to vector<16x1xf32>
    %cst_63 = arith.constant 3.200000e+01 : f32
    %141 = vector.broadcast %cst_63 : f32 to vector<16x1xf32>
    %142 = arith.divf %140, %141 : vector<16x1xf32>
    %143 = vector.broadcast %142 : vector<16x1xf32> to vector<16x32xf32>
    %144 = arith.subf %134, %143 : vector<16x32xf32>
    %145 = arith.mulf %144, %144 : vector<16x32xf32>
    %cst_64 = arith.constant dense<0.000000e+00> : vector<16xf32>
    %146 = vector.multi_reduction <add>, %145, %cst_64 [1] : vector<16x32xf32> to vector<16xf32>
    %147 = vector.shape_cast %146 : vector<16xf32> to vector<16x1xf32>
    %cst_65 = arith.constant 3.200000e+01 : f32
    %148 = vector.broadcast %cst_65 : f32 to vector<16x1xf32>
    %149 = arith.divf %147, %148 : vector<16x1xf32>
    %150 = vector.broadcast %142 : vector<16x1xf32> to vector<16x32xf32>
    %151 = arith.subf %134, %150 : vector<16x32xf32>
    %cst_66 = arith.constant 9.99999974E-6 : f32
    %152 = vector.broadcast %cst_66 : f32 to vector<16x1xf32>
    %153 = arith.addf %149, %152 : vector<16x1xf32>
    %154 = math.rsqrt %153 : vector<16x1xf32>
    %155 = vector.broadcast %154 : vector<16x1xf32> to vector<16x32xf32>
    %156 = arith.mulf %151, %155 : vector<16x32xf32>
    %157 = vector.broadcast %136 : vector<1x32xf32> to vector<16x32xf32>
    %158 = arith.mulf %156, %157 : vector<16x32xf32>
    %159 = vector.broadcast %138 : vector<1x32xf32> to vector<16x32xf32>
    %160 = arith.addf %158, %159 : vector<16x32xf32>
    %161 = arith.truncf %160 : vector<16x32xf32> to vector<16x32xbf16>
    %c0_67 = arith.constant 0 : index
    %c0_68 = arith.constant 0 : index
    %c0_69 = arith.constant 0 : index
    %162 = vector.load %arg14[%c0_67, %c0_68, %c0_69] : memref<1x32x128xbf16, #tpu.memory_space<vmem>>, vector<1x32x128xbf16>
    %163 = vector.shape_cast %162 : vector<1x32x128xbf16> to vector<32x128xbf16>
    %cst_70 = arith.constant dense<0.000000e+00> : vector<16x128xf32>
    %164 = tpu.matmul %161, %163, %cst_70 {dimension_numbers = #tpu.dot_dimension_numbers<[1], [0], [0], [1], [0, 0, 1, 1], [], []>} : vector<16x32xbf16>, vector<32x128xbf16>, vector<16x128xf32> -> vector<16x128xf32>
    %c0_71 = arith.constant 0 : index
    %c0_72 = arith.constant 0 : index
    %c0_73 = arith.constant 0 : index
    %165 = vector.load %arg15[%c0_71, %c0_72, %c0_73] : memref<1x1x128xf32, #tpu.memory_space<vmem>>, vector<1x1x128xf32>
    %166 = vector.shape_cast %165 : vector<1x1x128xf32> to vector<1x128xf32>
    %167 = vector.broadcast %166 : vector<1x128xf32> to vector<16x128xf32>
    %168 = arith.addf %164, %167 : vector<16x128xf32>
    %cst_74 = arith.constant 1.702000e+00 : f32
    %169 = vector.broadcast %cst_74 : f32 to vector<16x128xf32>
    %170 = arith.mulf %169, %168 : vector<16x128xf32>
    %171 = arith.negf %170 : vector<16x128xf32>
    %172 = math.exp %171 : vector<16x128xf32>
    %cst_75 = arith.constant 1.000000e+00 : f32
    %173 = vector.broadcast %cst_75 : f32 to vector<16x128xf32>
    %174 = arith.addf %173, %172 : vector<16x128xf32>
    %175 = arith.divf %173, %174 : vector<16x128xf32>
    %176 = arith.mulf %168, %175 : vector<16x128xf32>
    %177 = arith.truncf %176 : vector<16x128xf32> to vector<16x128xbf16>
    %c0_76 = arith.constant 0 : index
    %c0_77 = arith.constant 0 : index
    %c0_78 = arith.constant 0 : index
    %178 = vector.load %arg16[%c0_76, %c0_77, %c0_78] : memref<1x128x32xbf16, #tpu.memory_space<vmem>>, vector<1x128x32xbf16>
    %179 = vector.shape_cast %178 : vector<1x128x32xbf16> to vector<128x32xbf16>
    %cst_79 = arith.constant dense<0.000000e+00> : vector<16x32xf32>
    %180 = tpu.matmul %177, %179, %cst_79 {dimension_numbers = #tpu.dot_dimension_numbers<[1], [0], [0], [1], [0, 0, 1, 1], [], []>} : vector<16x128xbf16>, vector<128x32xbf16>, vector<16x32xf32> -> vector<16x32xf32>
    %c0_80 = arith.constant 0 : index
    %c0_81 = arith.constant 0 : index
    %c0_82 = arith.constant 0 : index
    %181 = vector.load %arg17[%c0_80, %c0_81, %c0_82] : memref<1x1x32xf32, #tpu.memory_space<vmem>>, vector<1x1x32xf32>
    %182 = vector.shape_cast %181 : vector<1x1x32xf32> to vector<1x32xf32>
    %183 = vector.broadcast %182 : vector<1x32xf32> to vector<16x32xf32>
    %184 = arith.addf %180, %183 : vector<16x32xf32>
    %185 = arith.addf %134, %184 : vector<16x32xf32>
    %c0_83 = arith.constant 0 : index
    %c0_84 = arith.constant 0 : index
    %186 = vector.load %arg19[%c0_83, %c0_84] : memref<16x32xf32, #tpu.memory_space<vmem>>, vector<16x32xf32>
    tpu.vector_store %arg19[%c0_83, %c0_84], %185 {strides = array<i32>} : memref<16x32xf32, #tpu.memory_space<vmem>>, vector<16x32xf32>,
    %c1_i32 = arith.constant 1 : i32
    %187 = arith.cmpi eq, %arg0, %c1_i32 : i32
    %188 = arith.extui %187 : i1 to i32
    %c0_i32_85 = arith.constant 0 : i32
    %189 = arith.cmpi ne, %188, %c0_i32_85 : i32
    scf.if %189 {
      %190 = vector.shape_cast %185 : vector<16x32xf32> to vector<2x8x32xf32>
      %c0_86 = arith.constant 0 : index
      %c0_87 = arith.constant 0 : index
      %c0_88 = arith.constant 0 : index
      %191 = vector.load %arg18[%c0_86, %c0_87, %c0_88] : memref<2x8x32xf32, #tpu.memory_space<vmem>>, vector<2x8x32xf32>
      tpu.vector_store %arg18[%c0_86, %c0_87, %c0_88], %190 {strides = array<i32>} : memref<2x8x32xf32, #tpu.memory_space<vmem>>, vector<2x8x32xf32>,
    } else {
    }
    return
  }
  func.func @transform_0(%arg0: i32) -> (i32, i32, i32) {
    %c0_i32 = arith.constant 0 : i32
    %c0_i32_0 = arith.constant 0 : i32
    %c0_i32_1 = arith.constant 0 : i32
    %c0_i32_2 = arith.constant 0 : i32
    return %c0_i32, %c0_i32_0, %c0_i32_1 : i32, i32, i32
  }
  func.func @transform_1(%arg0: i32) -> (i32, i32, i32) {
    %c0_i32 = arith.constant 0 : i32
    %c0_i32_0 = arith.constant 0 : i32
    %c0_i32_1 = arith.constant 0 : i32
    return %arg0, %c0_i32, %c0_i32_0 : i32, i32, i32
  }
  func.func @transform_2(%arg0: i32) -> (i32, i32, i32) {
    %c0_i32 = arith.constant 0 : i32
    %c0_i32_0 = arith.constant 0 : i32
    %c0_i32_1 = arith.constant 0 : i32
    return %arg0, %c0_i32, %c0_i32_0 : i32, i32, i32
  }
  func.func @transform_3(%arg0: i32) -> (i32, i32, i32) {
    %c0_i32 = arith.constant 0 : i32
    %c0_i32_0 = arith.constant 0 : i32
    %c0_i32_1 = arith.constant 0 : i32
    return %arg0, %c0_i32, %c0_i32_0 : i32, i32, i32
  }
  func.func @transform_4(%arg0: i32) -> (i32, i32, i32) {
    %c0_i32 = arith.constant 0 : i32
    %c0_i32_0 = arith.constant 0 : i32
    %c0_i32_1 = arith.constant 0 : i32
    return %arg0, %c0_i32, %c0_i32_0 : i32, i32, i32
  }
  func.func @transform_5(%arg0: i32) -> (i32, i32, i32) {
    %c0_i32 = arith.constant 0 : i32
    %c0_i32_0 = arith.constant 0 : i32
    %c0_i32_1 = arith.constant 0 : i32
    return %arg0, %c0_i32, %c0_i32_0 : i32, i32, i32
  }
  func.func @transform_6(%arg0: i32) -> (i32, i32, i32) {
    %c0_i32 = arith.constant 0 : i32
    %c0_i32_0 = arith.constant 0 : i32
    %c0_i32_1 = arith.constant 0 : i32
    return %arg0, %c0_i32, %c0_i32_0 : i32, i32, i32
  }
  func.func @transform_7(%arg0: i32) -> (i32, i32, i32) {
    %c0_i32 = arith.constant 0 : i32
    %c0_i32_0 = arith.constant 0 : i32
    %c0_i32_1 = arith.constant 0 : i32
    return %arg0, %c0_i32, %c0_i32_0 : i32, i32, i32
  }
  func.func @transform_8(%arg0: i32) -> (i32, i32, i32) {
    %c0_i32 = arith.constant 0 : i32
    %c0_i32_0 = arith.constant 0 : i32
    %c0_i32_1 = arith.constant 0 : i32
    return %arg0, %c0_i32, %c0_i32_0 : i32, i32, i32
  }
  func.func @transform_9(%arg0: i32) -> (i32, i32, i32) {
    %c0_i32 = arith.constant 0 : i32
    %c0_i32_0 = arith.constant 0 : i32
    %c0_i32_1 = arith.constant 0 : i32
    return %arg0, %c0_i32, %c0_i32_0 : i32, i32, i32
  }
  func.func @transform_10(%arg0: i32) -> (i32, i32, i32) {
    %c0_i32 = arith.constant 0 : i32
    %c0_i32_0 = arith.constant 0 : i32
    %c0_i32_1 = arith.constant 0 : i32
    return %arg0, %c0_i32, %c0_i32_0 : i32, i32, i32
  }
  func.func @transform_11(%arg0: i32) -> (i32, i32, i32) {
    %c0_i32 = arith.constant 0 : i32
    %c0_i32_0 = arith.constant 0 : i32
    %c0_i32_1 = arith.constant 0 : i32
    return %arg0, %c0_i32, %c0_i32_0 : i32, i32, i32
  }
  func.func @transform_12(%arg0: i32) -> (i32, i32, i32) {
    %c0_i32 = arith.constant 0 : i32
    %c0_i32_0 = arith.constant 0 : i32
    %c0_i32_1 = arith.constant 0 : i32
    return %arg0, %c0_i32, %c0_i32_0 : i32, i32, i32
  }
  func.func @transform_13(%arg0: i32) -> (i32, i32, i32) {
    %c0_i32 = arith.constant 0 : i32
    %c0_i32_0 = arith.constant 0 : i32
    %c0_i32_1 = arith.constant 0 : i32
    return %arg0, %c0_i32, %c0_i32_0 : i32, i32, i32
  }
  func.func @transform_14(%arg0: i32) -> (i32, i32, i32) {
    %c0_i32 = arith.constant 0 : i32
    %c0_i32_0 = arith.constant 0 : i32
    %c0_i32_1 = arith.constant 0 : i32
    return %arg0, %c0_i32, %c0_i32_0 : i32, i32, i32
  }
  func.func @transform_15(%arg0: i32) -> (i32, i32, i32) {
    %c0_i32 = arith.constant 0 : i32
    %c0_i32_0 = arith.constant 0 : i32
    %c0_i32_1 = arith.constant 0 : i32
    return %arg0, %c0_i32, %c0_i32_0 : i32, i32, i32
  }
  func.func @transform_16(%arg0: i32) -> (i32, i32, i32) {
    %c0_i32 = arith.constant 0 : i32
    %c0_i32_0 = arith.constant 0 : i32
    %c0_i32_1 = arith.constant 0 : i32
    return %arg0, %c0_i32, %c0_i32_0 : i32, i32, i32
  }
  func.func @transform_17(%arg0: i32) -> (i32, i32, i32) {
    %c0_i32 = arith.constant 0 : i32
    %c0_i32_0 = arith.constant 0 : i32
    %c0_i32_1 = arith.constant 0 : i32
    %c0_i32_2 = arith.constant 0 : i32
    return %c0_i32, %c0_i32_0, %c0_i32_1 : i32, i32, i32
  }
}

</mosaic_0001>

<bundles_post_ra>
// kernel: tpu_custom_call.1
= control target key start
LH: loop header
LB: loop body
LE: loop exit
PB: predicated region body
PF: predicated region fallthrough
CT: control target
= control target key end

     0   :  { %s3937_s0 = inlined_call_operand.hbm [shape: f32[2,8,32], index: 0, kind: input, shape index: {}]   ;;  %s3938_s1 = inlined_call_operand.vmem [shape: f32[2,1,32], index: 1, kind: input, shape index: {}]   ;;  %s3939_s2 = inlined_call_operand.vmem [shape: f32[2,1,32], index: 2, kind: input, shape index: {}]   ;;  %s3940_s3 = inlined_call_operand.vmem [shape: bf16[2,32,32], index: 3, kind: input, shape index: {}]   ;;  %s3941_s4 = inlined_call_operand.vmem [shape: bf16[2,32,32], index: 4, kind: input, shape index: {}]   ;;  %s3942_s5 = inlined_call_operand.vmem [shape: bf16[2,32,32], index: 5, kind: input, shape index: {}]   ;;  %s3943_s6 = inlined_call_operand.vmem [shape: f32[2,1,32], index: 6, kind: input, shape index: {}]   ;;  %s3944_s7 = inlined_call_operand.vmem [shape: f32[2,1,32], index: 7, kind: input, shape index: {}]   ;;  %s3945_s8 = inlined_call_operand.vmem [shape: f32[2,1,32], index: 8, kind: input, shape index: {}]   ;;  %s3946_s9 = inlined_call_operand.vmem [shape: bf16[2,32,32], index: 9, kind: input, shape index: {}]   ;;  %s3947_s10 = inlined_call_operand.vmem [shape: f32[2,1,32], index: 10, kind: input, shape index: {}]   ;;  %s3948_s11 = inlined_call_operand.vmem [shape: f32[2,1,32], index: 11, kind: input, shape index: {}]   ;;  %s3949_s12 = inlined_call_operand.vmem [shape: f32[2,1,32], index: 12, kind: input, shape index: {}]   ;;  %s3950_s13 = inlined_call_operand.vmem [shape: bf16[2,32,128], index: 13, kind: input, shape index: {}]   ;;  %s3951_s14 = inlined_call_operand.vmem [shape: f32[2,1,128], index: 14, kind: input, shape index: {}]   ;;  %s3952_s15 = inlined_call_operand.vmem [shape: bf16[2,128,32], index: 15, kind: input, shape index: {}]   ;;  %s3953_s16 = inlined_call_operand.vmem [shape: f32[2,1,32], index: 16, kind: input, shape index: {}]   ;;  %s3954_s17 = inlined_call_operand.hbm [shape: f32[2,8,32], index: 17, kind: output, shape index: {}]  }
   0x1   :  { %3963 = sst [smem:[#allocation11_spill]] %s3937_s0 }
   0x2   :  { %3964 = sst [smem:[#allocation12_spill]] %s3938_s1 }
   0x3   :  { %3965 = sst [smem:[#allocation13_spill]] %s3939_s2 }
   0x4   :  { %3966 = sst [smem:[#allocation14_spill]] %s3940_s3 }
   0x5   :  { %3967 = sst [smem:[#allocation15_spill]] %s3941_s4 }
   0x6   :  { %3968 = sst [smem:[#allocation16_spill]] %s3942_s5 }
   0x7   :  { %3969 = sst [smem:[#allocation17_spill]] %s3943_s6 }
   0x8   :  { %3970 = sst [smem:[#allocation18_spill]] %s3946_s9 }
   0x9   :  { %3971 = sst [smem:[#allocation19_spill]] %s3954_s17 }
   0xa   :  { %22 = vsyncpa [#allocation4], 0 }
   0xb   :  { %23 = vsyncpa [#allocation5], 0  ;;  %s3496_s24 = smov 0  }
   0xc LB: > { %3972 = sst [smem:[#allocation9_spill]] %s3391_s24  ;;  %s3502_s25 = sadd.s32 4294967295, %s3391_s24   ;;  %s3391_s24 = sphi %s3496_s24, %s29_s24  }
   0xd   : > { %3973 = sst [smem:[#allocation10_spill]] %s3502_s25  ;;  %p2921_p0 = scmp.ge.s32.totalorder %s3391_s24, 1 }
   0xe   : > { %p492_p1 = scmp.lt.s32.totalorder %s3391_s24, 3  ;;  %s3393_s26 = smov [#allocation3]  }
   0xf   : > { %s504_s27 = sshll.u32 %s3393_s26, 4  ;;  %p3956_p4 = scmp.eq.s32.totalorder %s3502_s25, 0  ;;  %s505_s27 = int_to_ptr.vmem [resolvable:$true] %s504_s27 }
  0x10   : > { %p3507_p3 = pnand %p2921_p0, %p492_p1  ;;  %s3976_s18 = sld [smem:[#allocation11_spill]] }
  0x12   : > { %s3974_s28 = scalar_select %p3507_p3, 1, 0 }
  0x13   : > { %p3213_p5 = pneg %p3507_p3 }
  0x15   : > { %p3516_p6 = pnand %p3956_p4, %p3213_p5 }
  0x16   : > { %s3323_s19 = scalar_lea.hbm %s3976_s18, 256 }
  0x17   : > { %p3324_p7 = scmp.ne.s32.totalorder %s3976_s18, %s3323_s19  ;;  %p3325_p8 = pneg %p3516_p6 }
  0x18   : > { %p3330_p11 = scmp.lt.u32.totalorder %s3323_s19, %s3976_s18 }
  0x19   : > { %p3326_p9 = pnand %p3325_p8, %p3324_p7 }
  0x1b   : > { %p3327_p10 = pneg %p3326_p9 }
  0x1d   : > { %p3332_p12 = pnand %p3330_p11, %p3327_p10 }
  0x1f   : > { %3335 = shalt.err (!%p3332_p12)
}
  0x20   : > { %s3336_s23 = scalar_lea.vmem %s505_s27, 256  ;;  %p3344_p5 = scmp.lt.s32.totalorder %s505_s27, %s505_s27 }
  0x21   : > { %p3337_p13 = scmp.ne.s32.totalorder %s505_s27, %s3336_s23  ;;  %p3345_p2 = scmp.lt.s32.totalorder %s3336_s23, %s3336_s23 }
  0x23   : > { %p3339_p0 = pnand %p3337_p13, %p3325_p8  ;;  %p3346_p4 = por %p3345_p2, %p3344_p5 }
  0x25   : > { %p3340_p1 = pneg %p3339_p0 }
  0x27   : > { %p3347_p3 = pnand %p3346_p4, %p3340_p1 }
  0x29   : > { %3350 = shalt.err (!%p3347_p3)
}
  0x2a   : > { %s3394_s26 = smov 128   ;;  %s3395_s0 = smov 8  }
  0x2b   : > { %3216 = dma.hbm_to_vmem [thread:$0]  (!%p3516_p6), %s3976_s18, 256, %s505_s27, [#allocation4], %s3394_s26, %s3394_s26, %s3395_s0  }
  0x2c   : > { %p3977_p7 = scmp.ne.s32.totalorder %s3974_s28, 0 }
  0x2d   : > { %p3978_p9 = scmp.eq.s32.totalorder (!%p3977_p7), %s3502_s25, 0 }
  0x2e   : > { %628 = sbr.rel (%p3977_p7) target bundleno = 4149 (0x1035), region = 88 }
  0x35   : > { %3382 = dma.done.wait (%p3978_p9), [#allocation4], 256   ;;  %p3979_p8 = pmov %p3978_p9 }
  0x36   : > { %p730_p2 = scmp.lt.s32.totalorder %s3502_s25, 1  ;;  %s3983_s3 = sld [smem:[#allocation14_spill]] }
  0x37   : > { %3384 = vsyncadd (%p3979_p8), [#allocation4], 4294967040  ;;  %s3984_s4 = sld [smem:[#allocation15_spill]]  ;;  %s3985_s5 = sld [smem:[#allocation16_spill]] }
  0x38   : > { %s3544_s19 = scalar_select %p730_p2, %s3502_s25, 1 }
  0x39   : > { %s3986_s9 = sld [smem:[#allocation18_spill]]  ;;  %s3987_s23 = sld [smem:[#allocation10_spill]] }
  0x3a   : > { %s3003_s26 = sshll.u32 %s3544_s19, 4  ;;  %s773_s22 = scalar_lea.vmem %s3949_s12, %s3544_s19 }
  0x3b   : > { %s3602_s30 = scalar_lea.vmem %s3950_s13, %s3003_s26  ;;  %s781_s29 = scalar_lea.vmem %s3951_s14, %s3544_s19 }
  0x3c   : > { %s3562_s18 = scalar_lea.vmem %s3983_s3, %s3003_s26  ;;  %s789_s2 = scalar_lea.vmem %s3953_s16, %s3544_s19 }
  0x3d   : > { %s3567_s25 = scalar_lea.vmem %s3984_s4, %s3003_s26  ;;  %s3572_s28 = scalar_lea.vmem %s3985_s5, %s3003_s26 }
  0x3e   : > { %s770_s5 = scalar_lea.vmem %s3948_s11, %s3544_s19 }
  0x3f   : > { %s3585_s6 = scalar_lea.vmem %s3986_s9, %s3003_s26  ;;  %s3008_s9 = sshll.u32 %s3544_s19, 6 }
  0x40   : > { %s3612_s4 = scalar_lea.vmem %s3952_s15, %s3008_s9  ;;  %p3988_p3 = scmp.ne.s32.totalorder %s3987_s23, 0 }
  0x41   : > { %v795_v0 = vld [vmem:[#allocation3] sm:$0xff] (!%p3988_p3)  ;;  %vm797_vm0 = vcmask (!%p3988_p3), 261120   ;;  %v796_v1 = vld [vmem:[#allocation3 + $0x8] sm:$0xff] (!%p3988_p3) }
  0x42   : > { %794 = sbr.rel (%p3988_p3) target bundleno = 73 (0x49), region = 96  ;;  %798 = vst.msk [vmem:[#allocation2] sm:$0xff] (!%p3988_p3), %vm797_vm0, %v795_v0  ;;  %799 = vst.msk [vmem:[#allocation2 + $0x8] sm:$0xff] (!%p3988_p3), %vm797_vm0, %v796_v1 }
  0x49 PF: > { %v3620_v2 = vld [vmem:[#allocation2] sm:$0xff]  ;;  %vm804_vm1 = vcmask 261120   ;;  %v3622_v3 = vld [vmem:[#allocation2 + $0x8] sm:$0xff]  ;;  %v3396_v17 = vmov 0.0   ;;  %vm3397_vm2 = vmmov 0   ;;  %s3989_s26 = sld [smem:[#allocation12_spill]]  ;;  %s3993_s24 = scalar_lea.vmem %s3944_s7, %s3544_s19 }
  0x4a   : > { %v805_v4 = vsel %vm804_vm1, %v3620_v2, 0.0  ;;  %v808_v5 = vsel %vm804_vm1, %v3622_v3, 0.0  ;;  %v3257_v16 = vld [vmem:[%s3562_s18] sm:$0xff]   ;;  %3065 = vmatprep.subr.bf16.mxu1 %v3396_v17  ;;  %3099 = vmatprep.subr.mxu0 %v3396_v17  ;;  %v3258_v18 = vld [vmem:[%s3562_s18 + $0x8] sm:$0xff]   ;;  %s3991_s20 = sld [smem:[#allocation13_spill]]  ;;  %vm1044_vm3 = vcmask 64512   ;;  %s3997_s27 = scalar_lea.vmem %s3947_s10, %s3544_s19 }
  0x4b   : > { %806 = vadd.xlane.f32.xlu0 %v805_v4  ;;  %3066 = vmatpush3.bf16.msra.mxu1 %v3257_v16  ;;  %v3259_v35 = vld [vmem:[%s3567_s25] sm:$0xff]   ;;  %v3260_v37 = vld [vmem:[%s3567_s25 + $0x8] sm:$0xff]   ;;  %s3994_s23 = sld [smem:[#allocation17_spill]]  ;;  %s3398_s1 = smov 120   ;;  %vm2383_vm4 = vcmask 130048   ;;  %vm2386_vm5 = vcmask 195584  }
  0x4c   : > { %3069 = vmatprep.mubr.msk.bf16.mxu1 %vm3397_vm2, %v3396_v17  ;;  %3067 = vmatprep.subr.bf16.mxu1 %v3396_v17  ;;  %v3261_v38 = vld [vmem:[%s3572_s28] sm:$0xff]   ;;  %v3262_v39 = vld [vmem:[%s3572_s28 + $0x8] sm:$0xff]   ;;  %s3399_s3 = smov 112   ;;  %s3402_s25 = smov 16  }
  0x4d   : > { %3101 = vmatprep.mubr.msk.f32.mxu0 %vm3397_vm2, %v3396_v17  ;;  %v2945_v44 = vld [vmem:[%s3993_s24] ss:$0 sm:$0xff]  ;;  %s3403_s28 = smov 24   ;;  %s3998_s18 = sld [smem:[#allocation10_spill]] }
  0x4f   : > { %809 = vadd.xlane.f32.xlu0 %v808_v5  ;;  %3068 = vmatpush3.bf16.msra.mxu1 %v3258_v18  ;;  %s3990_s0 = scalar_lea.vmem %s3989_s26, %s3544_s19 }
  0x50   : > { %3073 = vmatprep.subr.bf16.mxu1 %v3396_v17  ;;  %v2939_v27 = vld [vmem:[%s3990_s0] ss:$0 sm:$0xff]  ;;  %s3992_s17 = scalar_lea.vmem %s3991_s20, %s3544_s19  ;;  %s3996_s0 = scalar_lea.vmem %s3945_s8, %s3544_s19 }
  0x51   : > { %v2940_v31 = vld [vmem:[%s3992_s17] ss:$0 sm:$0xff]  ;;  %s3995_s9 = scalar_lea.vmem %s3994_s23, %s3544_s19  ;;  %s3400_s20 = smov 104  }
  0x52   : > { %v2941_v46 = vld [vmem:[%s3995_s9] ss:$0 sm:$0xff]  ;;  %s3401_s17 = smov 8  }
  0x53   : > { %v2949_v53 = vld [vmem:[%s3996_s0] ss:$0 sm:$0xff]  ;;  %p2998_p4 = scmp.ne.s32.totalorder %s3998_s18, 1 }
  0xd8   : > { %v807_v6 = vpop.xlane.xlu0 %806 }
  0xd9   : > { %v812_v7 = vmul.f32 0.03125, %v807_v6 }
  0xdb   : > { %v814_v8 = vsub.f32 %v3620_v2, %v812_v7 }
  0xdc   : > { %v810_v9 = vpop.xlane.xlu0 %809 }
  0xdd   : > { %v813_v10 = vmul.f32 0.03125, %v810_v9  ;;  %v816_v11 = vmul.f32 %v814_v8, %v814_v8 }
  0xdf   : > { %v815_v12 = vsub.f32 %v3622_v3, %v813_v10  ;;  %v818_v13 = vsel %vm804_vm1, %v816_v11, 0.0 }
  0xe0   : > { %819 = vadd.xlane.f32.xlu1 %v818_v13 }
  0xe1   : > { %v817_v14 = vmul.f32 %v815_v12, %v815_v12 }
  0xe3   : > { %v821_v15 = vsel %vm804_vm1, %v817_v14, 0.0 }
  0xe4   : > { %822 = vadd.xlane.f32.xlu1 %v821_v15 }
 0x16d   : > { %v820_v19 = vpop.xlane.xlu1 %819 }
 0x16e   : > { %v824_v20 = vmul.f32 0.03125, %v820_v19 }
 0x170   : > { %v826_v21 = vadd.f32 1e-05, %v824_v20 }
 0x171   : > { %v823_v22 = vpop.xlane.xlu1 %822 }
 0x172   : > { %3275 = vrsqrt.f32 %v826_v21  ;;  %v825_v23 = vmul.f32 0.03125, %v823_v22 }
 0x174   : > { %v827_v24 = vadd.f32 1e-05, %v825_v23 }
 0x176   : > { %3277 = vrsqrt.f32 %v827_v24 }
 0x17c   : > { %v3276_v25 = vpop.eup %3275 }
 0x17d   : > { %v830_v26 = vmul.f32 %v3276_v25, %v814_v8 }
 0x17f   : > { %v838_v30 = vmul.f32 %v2939_v27, %v830_v26 }
 0x180   : > { %v3278_v28 = vpop.eup %3277 }
 0x181   : > { %v831_v29 = vmul.f32 %v3278_v28, %v815_v12  ;;  %v846_v33 = vadd.f32 %v2940_v31, %v838_v30 }
 0x183   : > { %v839_v32 = vmul.f32 %v2939_v27, %v831_v29 }
 0x185   : > { %v847_v34 = vadd.f32 %v2940_v31, %v839_v32 }
 0x187   : > { %v848_v36 = vpack.c.bf16 %v847_v34, %v846_v33 }
 0x189   : > { %3070 = vmatmul.mubr.msk.bf16.vlgmr.msra.gmra.mrb[0].mxu1 %vm804_vm1, %v848_v36 }
 0x18a   : > { %3074 = vmatpush3.bf16.msra.mxu1 %v3259_v35  ;;  %3077 = vmatprep.mubr.msk.bf16.mxu1 %vm3397_vm2, %v3396_v17 }
 0x18b   : > { %3075 = vmatprep.subr.bf16.mxu1 %v3396_v17 }
 0x18e   : > { %3076 = vmatpush3.bf16.msra.mxu1 %v3260_v37 }
 0x18f   : > { %3081 = vmatprep.subr.bf16.mxu1 %v3396_v17 }
 0x191   : > { %3078 = vmatmul.mubr.msk.bf16.vlgmr.msra.gmra.mrb[4].mxu1 %vm804_vm1, %v848_v36 }
 0x192   : > { %3082 = vmatpush3.bf16.msra.mxu1 %v3261_v38  ;;  %3085 = vmatprep.mubr.msk.bf16.mxu1 %vm3397_vm2, %v3396_v17 }
 0x193   : > { %3083 = vmatprep.subr.bf16.mxu1 %v3396_v17 }
 0x196   : > { %3084 = vmatpush3.bf16.msra.mxu1 %v3262_v39 }
 0x197   : > { %3089 = vmatprep.subr.mxu1 %v3396_v17 }
 0x199   : > { %3086 = vmatmul.mubr.msk.bf16.vlgmr.msra.gmra.mrb[8].mxu1 %vm804_vm1, %v848_v36 }
 0x19a   : > { %3091 = vmatprep.mubr.msk.f32.mxu1 %vm3397_vm2, %v3396_v17 }
 0x25c   : > { %v909_v40 = vpop.f32.mrb[0].mxu1 }
 0x25d   : > { %v3071_v41 = vpop.f32.mrb[1].mxu1  ;;  %v3683_v51 = vadd.f32 %v2941_v46, %v909_v40 }
 0x25e   : > { %v912_v42 = vpop.f32.mrb[2].mxu1 }
 0x25f   : > { %v3072_v43 = vpop.f32.mrb[3].mxu1  ;;  %v3699_v54 = vadd.f32 %v2941_v46, %v912_v42 }
 0x264   : > { %v973_v45 = vpop.f32.mrb[4].mxu1 }
 0x265   : > { %v3679_v47 = vadd.f32 %v2945_v44, %v973_v45  ;;  %v3079_v48 = vpop.f32.mrb[5].mxu1 }
 0x266   : > { %v976_v49 = vpop.f32.mrb[6].mxu1 }
 0x267   : > { %v3080_v50 = vpop.f32.mrb[7].mxu1  ;;  %3090 = vmatpush3.xpose.msk.msra.mxu1 %vm1044_vm3, %v3679_v47  ;;  %v3686_v52 = vadd.f32 %v2945_v44, %v976_v49 }
 0x268   : > { %3094 = vmatprep.subr.mxu1 %v3396_v17 }
 0x26a   : > { %3092 = vmatmul.mubr.msk.f32.vlgmr.msra.gmra.mrb[12].mxu1 %vm1044_vm3, %v3683_v51 }
 0x26b   : > { %3095 = vmatpush3.xpose.msk.msra.mxu1 %vm1044_vm3, %v3686_v52  ;;  %3096 = vmatprep.mubr.msk.f32.mxu1 %vm3397_vm2, %v3396_v17 }
 0x26c   : > { %v1037_v55 = vpop.f32.mrb[8].mxu1  ;;  %3114 = vmatprep.subr.mxu1 %v3396_v17 }
 0x26d   : > { %v3702_v56 = vadd.f32 %v2949_v53, %v1037_v55  ;;  %v3087_v57 = vpop.f32.mrb[9].mxu1 }
 0x26e   : > { %v1040_v58 = vpop.f32.mrb[10].mxu1  ;;  %3097 = vmatmul.mubr.msk.f32.vlgmr.msra.gmra.mrb[14].mxu1 %vm1044_vm3, %v3699_v54 }
 0x26f   : > { %v3706_v59 = vadd.f32 %v2949_v53, %v1040_v58  ;;  %v3088_v60 = vpop.f32.mrb[11].mxu1  ;;  %3100 = vmatpush3.msra.mxu0 %v3702_v56  ;;  %3116 = vmatprep.mubr.msk.f32.mxu1 %vm3397_vm2, %v3396_v17 }
 0x270   : > { %3104 = vmatprep.subr.mxu0 %v3396_v17 }
 0x33d   : > { %v1117_v61 = vpop.f32.mrb[12].mxu1 }
 0x33e   : > { %v3093_v62 = vpop.f32.mrb[13].mxu1  ;;  %v1197_v63 = vsel %vm1044_vm3, %v1117_v61, -inf }
 0x33f   : > { %1198 = vmax.xlane.f32.xlu0 %v1197_v63 }
 0x341   : > { %v1193_v0 = vpop.f32.mrb[14].mxu1 }
 0x342   : > { %v3098_v1 = vpop.f32.mrb[15].mxu1  ;;  %v1200_v4 = vsel %vm1044_vm3, %v1193_v0, -inf }
 0x343   : > { %1201 = vmax.xlane.f32.xlu1 %v1200_v4 }
 0x354   : > { %1445 = vrot.lane.b32.xlu1 %v3686_v52, %s3398_s1 }
 0x358   : > { %1365 = vrot.lane.b32.xlu1 %v3683_v51, %s3398_s1 }
 0x3cc   : > { %v1199_v5 = vpop.xlane.xlu0 %1198 }
 0x3cd   : > { %v1203_v6 = vsub.f32 %v1117_v61, %v1199_v5 }
 0x3cf   : > { %v1205_v7 = vmul.f32 1.442695, %v1203_v6 }
 0x3d0   : > { %v1202_v8 = vpop.xlane.xlu1 %1201 }
 0x3d1   : > { %3279 = vpow2.f32 %v1205_v7  ;;  %v1204_v9 = vsub.f32 %v1193_v0, %v1202_v8 }
 0x3d3   : > { %v1207_v10 = vmul.f32 1.442695, %v1204_v9 }
 0x3d4   : > { %v1446_v11 = vpop.permute.xlu1 %1445 }
 0x3d5   : > { %3281 = vpow2.f32 %v1207_v10  ;;  %3115 = vmatpush3.xpose.msk.msra.mxu1 %vm1044_vm3, %v1446_v11 }
 0x3d6   : > { %3124 = vmatprep.subr.mxu1 %v3396_v17 }
 0x3d8   : > { %v1366_v16 = vpop.permute.xlu1 %1365 }
 0x3db   : > { %v3280_v12 = vpop.eup %3279 }
 0x3dc   : > { %v1209_v13 = vsel %vm1044_vm3, %v3280_v12, 0.0 }
 0x3dd   : > { %1210 = vadd.xlane.f32.xlu0 %v1209_v13 }
 0x3df   : > { %v3282_v14 = vpop.eup %3281 }
 0x3e0   : > { %v1212_v15 = vsel %vm1044_vm3, %v3282_v14, 0.0 }
 0x3e1   : > { %1213 = vadd.xlane.f32.xlu1 %v1212_v15 }
 0x3f2   : > { %1443 = vrot.lane.b32.xlu1 %v3699_v54, %s3398_s1 }
 0x3f3   : > { %1367 = vrot.lane.b32.xlu0 %v3679_v47, %s3398_s1 }
 0x46a   : > { %v1211_v18 = vpop.xlane.xlu0 %1210 }
 0x46b   : > { %3283 = vrcp.f32 %v1211_v18 }
 0x46e   : > { %v1214_v19 = vpop.xlane.xlu1 %1213  ;;  %v1368_v25 = vpop.permute.xlu0 %1367 }
 0x46f   : > { %3285 = vrcp.f32 %v1214_v19 }
 0x472   : > { %v1444_v20 = vpop.permute.xlu1 %1443 }
 0x473   : > { %3117 = vmatmul.mubr.msk.f32.vlgmr.msra.gmra.mrb[16].mxu1 %vm1044_vm3, %v1444_v20 }
 0x474   : > { %3126 = vmatprep.mubr.msk.f32.mxu1 %vm3397_vm2, %v3396_v17 }
 0x475   : > { %v3284_v21 = vpop.eup %3283 }
 0x476   : > { %v1217_v22 = vmul.f32 %v3284_v21, %v3280_v12 }
 0x478   : > { %3102 = vmatmul.mubr.msk.f32.vlgmr.msra.gmra.mrb[0].mxu0 %vm1044_vm3, %v1217_v22 }
 0x479   : > { %v3286_v23 = vpop.eup %3285  ;;  %3105 = vmatpush3.msra.mxu0 %v3706_v59  ;;  %3106 = vmatprep.mubr.msk.f32.mxu0 %vm3397_vm2, %v3396_v17 }
 0x47a   : > { %v1218_v24 = vmul.f32 %v3286_v23, %v3282_v14  ;;  %3109 = vmatprep.subr.mxu0 %v3396_v17 }
 0x47c   : > { %3107 = vmatmul.mubr.msk.f32.vlgmr.msra.gmra.mrb[2].mxu0 %vm1044_vm3, %v1218_v24 }
 0x47d   : > { %3111 = vmatprep.mubr.msk.f32.mxu0 %vm3397_vm2, %v3396_v17 }
 0x480   : > { %3110 = vmatpush3.xpose.msk.msra.mxu0 %vm1044_vm3, %v1368_v25 }
 0x481   : > { %3119 = vmatprep.subr.mxu0 %v3396_v17 }
 0x483   : > { %3112 = vmatmul.mubr.msk.f32.vlgmr.msra.gmra.mrb[4].mxu0 %vm1044_vm3, %v1366_v16 }
 0x484   : > { %3121 = vmatprep.mubr.msk.f32.mxu0 %vm3397_vm2, %v3396_v17 }
 0x546   : > { %v1517_v26 = vpop.f32.mrb[16].mxu1 }
 0x547   : > { %v3118_v27 = vpop.f32.mrb[17].mxu1  ;;  %v1524_v28 = vsel %vm1044_vm3, %v1517_v26, -inf }
 0x548   : > { %1525 = vmax.xlane.f32.xlu1 %v1524_v28 }
 0x54b   : > { %v3743_v29 = vpop.f32.mrb[0].mxu0 }
 0x54c   : > { %v3103_v30 = vpop.f32.mrb[1].mxu0 }
 0x54f   : > { %v3745_v31 = vpop.f32.mrb[2].mxu0 }
 0x550   : > { %v3108_v32 = vpop.f32.mrb[3].mxu0 }
 0x556   : > { %v1439_v33 = vpop.f32.mrb[4].mxu0 }
 0x557   : > { %v3113_v34 = vpop.f32.mrb[5].mxu0  ;;  %v1521_v35 = vsel %vm1044_vm3, %v1439_v33, -inf }
 0x558   : > { %1522 = vmax.xlane.f32.xlu0 %v1521_v35 }
 0x559   : > { %1621 = vrot.lane.b32.xlu1 %v3706_v59, %s3398_s1 }
 0x55d   : > { %1699 = vrot.lane.b32.xlu1 %v3679_v47, %s3399_s3 }
 0x561   : > { %1777 = vrot.lane.b32.xlu1 %v3686_v52, %s3399_s3 }
 0x565   : > { %1775 = vrot.lane.b32.xlu1 %v3699_v54, %s3399_s3 }
 0x5d5   : > { %v1526_v36 = vpop.xlane.xlu1 %1525 }
 0x5d6   : > { %v1528_v37 = vsub.f32 %v1517_v26, %v1526_v36 }
 0x5d8   : > { %v1531_v38 = vmul.f32 1.442695, %v1528_v37 }
 0x5d9   : > { %v1622_v39 = vpop.permute.xlu1 %1621 }
 0x5da   : > { %3287 = vpow2.f32 %v1531_v38  ;;  %3125 = vmatpush3.msra.mxu1 %v1622_v39 }
 0x5db   : > { %3134 = vmatprep.subr.mxu1 %v3396_v17 }
 0x5dd   : > { %v1700_v50 = vpop.permute.xlu1 %1699 }
 0x5e1   : > { %v1778_v55 = vpop.permute.xlu1 %1777 }
 0x5e4   : > { %v3288_v40 = vpop.eup %3287 }
 0x5e5   : > { %v1536_v41 = vsel %vm1044_vm3, %v3288_v40, 0.0  ;;  %v1523_v42 = vpop.xlane.xlu0 %1522  ;;  %v1776_v58 = vpop.permute.xlu1 %1775 }
 0x5e6   : > { %1537 = vadd.xlane.f32.xlu0 %v1536_v41  ;;  %v1527_v43 = vsub.f32 %v1439_v33, %v1523_v42 }
 0x5e8   : > { %v1529_v44 = vmul.f32 1.442695, %v1527_v43 }
 0x5ea   : > { %3289 = vpow2.f32 %v1529_v44 }
 0x5f4   : > { %v3290_v45 = vpop.eup %3289 }
 0x5f5   : > { %v1533_v46 = vsel %vm1044_vm3, %v3290_v45, 0.0 }
 0x5fc   : > { %1544 = vrot.lane.b32.xlu0 %v3702_v56, %s3398_s1 }
 0x61b   : > { %1534 = vadd.xlane.f32.xlu0 %v1533_v46 }
 0x631   : > { %1697 = vrot.lane.b32.xlu0 %v3683_v51, %s3399_s3 }
 0x673   : > { %v1538_v48 = vpop.xlane.xlu0 %1537 }
 0x674   : > { %3291 = vrcp.f32 %v1538_v48 }
 0x677   : > { %v1545_v49 = vpop.permute.xlu0 %1544 }
 0x678   : > { %3120 = vmatpush3.msra.mxu0 %v1545_v49 }
 0x679   : > { %3129 = vmatprep.subr.mxu0 %v3396_v17 }
 0x67e   : > { %v3292_v53 = vpop.eup %3291 }
 0x67f   : > { %v1542_v57 = vmul.f32 %v3292_v53, %v3288_v40 }
 0x681   : > { %3127 = vmatmul.mubr.msk.f32.vlgmr.msra.gmra.mrb[18].mxu1 %vm1044_vm3, %v1542_v57 }
 0x682   : > { %3135 = vmatpush3.xpose.msk.msra.mxu1 %vm1044_vm3, %v1778_v55  ;;  %3136 = vmatprep.mubr.msk.f32.mxu1 %vm3397_vm2, %v3396_v17 }
 0x683   : > { %3144 = vmatprep.subr.mxu1 %v3396_v17 }
 0x685   : > { %3137 = vmatmul.mubr.msk.f32.vlgmr.msra.gmra.mrb[20].mxu1 %vm1044_vm3, %v1776_v58 }
 0x686   : > { %3146 = vmatprep.mubr.msk.f32.mxu1 %vm3397_vm2, %v3396_v17 }
 0x6a8   : > { %v1535_v60 = vpop.xlane.xlu0 %1534 }
 0x6a9   : > { %3293 = vrcp.f32 %v1535_v60 }
 0x6ac   : > { %v1698_v63 = vpop.permute.xlu0 %1697 }
 0x6b3   : > { %v3294_v61 = vpop.eup %3293 }
 0x6b4   : > { %v1541_v62 = vmul.f32 %v3294_v61, %v3290_v45 }
 0x6b6   : > { %3122 = vmatmul.mubr.msk.f32.vlgmr.msra.gmra.mrb[6].mxu0 %vm1044_vm3, %v1541_v62 }
 0x6b7   : > { %3130 = vmatpush3.xpose.msk.msra.mxu0 %vm1044_vm3, %v1700_v50  ;;  %3131 = vmatprep.mubr.msk.f32.mxu0 %vm3397_vm2, %v3396_v17 }
 0x6b8   : > { %3139 = vmatprep.subr.mxu0 %v3396_v17 }
 0x6ba   : > { %3132 = vmatmul.mubr.msk.f32.vlgmr.msra.gmra.mrb[8].mxu0 %vm1044_vm3, %v1698_v63 }
 0x6bb   : > { %3141 = vmatprep.mubr.msk.f32.mxu0 %vm3397_vm2, %v3396_v17 }
 0x754   : > { %v3780_v0 = vpop.f32.mrb[18].mxu1 }
 0x755   : > { %v3128_v1 = vpop.f32.mrb[19].mxu1 }
 0x758   : > { %v1849_v4 = vpop.f32.mrb[20].mxu1 }
 0x759   : > { %v3138_v5 = vpop.f32.mrb[21].mxu1  ;;  %v1856_v6 = vsel %vm1044_vm3, %v1849_v4, -inf }
 0x75a   : > { %1857 = vmax.xlane.f32.xlu1 %v1856_v6 }
 0x76b   : > { %1951 = vrot.lane.b32.xlu1 %v3706_v59, %s3399_s3 }
 0x76f   : > { %2029 = vrot.lane.b32.xlu1 %v3679_v47, %s3400_s20 }
 0x773   : > { %2107 = vrot.lane.b32.xlu1 %v3686_v52, %s3400_s20 }
 0x777   : > { %2105 = vrot.lane.b32.xlu1 %v3699_v54, %s3400_s20 }
 0x789   : > { %v1616_v7 = vpop.f32.mrb[6].mxu0 }
 0x78a   : > { %v3242_v8 = vpack.i.bf16 %v3780_v0, %v1616_v7  ;;  %v3123_v9 = vpop.f32.mrb[7].mxu0 }
 0x78d   : > { %v1771_v10 = vpop.f32.mrb[8].mxu0 }
 0x78e   : > { %v3133_v11 = vpop.f32.mrb[9].mxu0  ;;  %v1853_v12 = vsel %vm1044_vm3, %v1771_v10, -inf }
 0x78f   : > { %1854 = vmax.xlane.f32.xlu0 %v1853_v12 }
 0x7e7   : > { %v1858_v13 = vpop.xlane.xlu1 %1857 }
 0x7e8   : > { %v1860_v14 = vsub.f32 %v1849_v4, %v1858_v13 }
 0x7ea   : > { %v1863_v15 = vmul.f32 1.442695, %v1860_v14 }
 0x7eb   : > { %v1952_v16 = vpop.permute.xlu1 %1951 }
 0x7ec   : > { %3295 = vpow2.f32 %v1863_v15  ;;  %3145 = vmatpush3.msra.mxu1 %v1952_v16 }
 0x7ed   : > { %3154 = vmatprep.subr.mxu1 %v3396_v17 }
 0x7ef   : > { %v2030_v24 = vpop.permute.xlu1 %2029 }
 0x7f3   : > { %v2108_v26 = vpop.permute.xlu1 %2107 }
 0x7f6   : > { %v3296_v47 = vpop.eup %3295 }
 0x7f7   : > { %v1868_v52 = vsel %vm1044_vm3, %v3296_v47, 0.0 }
 0x7f8   : > { %1869 = vadd.xlane.f32.xlu0 %v1868_v52 }
 0x80e   : > { %1875 = vrot.lane.b32.xlu0 %v3702_v56, %s3399_s3 }
 0x81c   : > { %v1855_v54 = vpop.xlane.xlu0 %1854 }
 0x81d   : > { %v1859_v18 = vsub.f32 %v1771_v10, %v1855_v54 }
 0x81f   : > { %v1861_v19 = vmul.f32 1.442695, %v1859_v18 }
 0x821   : > { %3297 = vpow2.f32 %v1861_v19 }
 0x82b   : > { %v3298_v20 = vpop.eup %3297 }
 0x82c   : > { %v1865_v21 = vsel %vm1044_vm3, %v3298_v20, 0.0 }
 0x82d   : > { %1866 = vadd.xlane.f32.xlu0 %v1865_v21 }
 0x843   : > { %2027 = vrot.lane.b32.xlu0 %v3683_v51, %s3400_s20  ;;  %v2106_v51 = vpop.permute.xlu1 %2105 }
 0x885   : > { %v1870_v22 = vpop.xlane.xlu0 %1869 }
 0x886   : > { %3299 = vrcp.f32 %v1870_v22 }
 0x889   : > { %v1876_v23 = vpop.permute.xlu0 %1875 }
 0x88a   : > { %3140 = vmatpush3.msra.mxu0 %v1876_v23 }
 0x88b   : > { %3149 = vmatprep.subr.mxu0 %v3396_v17 }
 0x890   : > { %v3300_v25 = vpop.eup %3299 }
 0x891   : > { %v1874_v27 = vmul.f32 %v3300_v25, %v3296_v47 }
 0x893   : > { %3147 = vmatmul.mubr.msk.f32.vlgmr.msra.gmra.mrb[22].mxu1 %vm1044_vm3, %v1874_v27 }
 0x894   : > { %3155 = vmatpush3.xpose.msk.msra.mxu1 %vm1044_vm3, %v2108_v26  ;;  %3156 = vmatprep.mubr.msk.f32.mxu1 %vm3397_vm2, %v3396_v17 }
 0x895   : > { %3164 = vmatprep.subr.mxu1 %v3396_v17 }
 0x897   : > { %3157 = vmatmul.mubr.msk.f32.vlgmr.msra.gmra.mrb[24].mxu1 %vm1044_vm3, %v2106_v51 }
 0x898   : > { %3166 = vmatprep.mubr.msk.f32.mxu1 %vm3397_vm2, %v3396_v17 }
 0x8ba   : > { %v1867_v28 = vpop.xlane.xlu0 %1866 }
 0x8bb   : > { %3301 = vrcp.f32 %v1867_v28 }
 0x8be   : > { %v2028_v33 = vpop.permute.xlu0 %2027 }
 0x8c5   : > { %v3302_v30 = vpop.eup %3301 }
 0x8c6   : > { %v1873_v32 = vmul.f32 %v3302_v30, %v3298_v20 }
 0x8c8   : > { %3142 = vmatmul.mubr.msk.f32.vlgmr.msra.gmra.mrb[10].mxu0 %vm1044_vm3, %v1873_v32 }
 0x8c9   : > { %3150 = vmatpush3.xpose.msk.msra.mxu0 %vm1044_vm3, %v2030_v24  ;;  %3151 = vmatprep.mubr.msk.f32.mxu0 %vm3397_vm2, %v3396_v17 }
 0x8ca   : > { %3159 = vmatprep.subr.mxu0 %v3396_v17 }
 0x8cc   : > { %3152 = vmatmul.mubr.msk.f32.vlgmr.msra.gmra.mrb[12].mxu0 %vm1044_vm3, %v2028_v33 }
 0x8cd   : > { %3161 = vmatprep.mubr.msk.f32.mxu0 %vm3397_vm2, %v3396_v17 }
 0x966   : > { %v2023_v34 = vpop.f32.mrb[22].mxu1 }
 0x967   : > { %v3148_v35 = vpop.f32.mrb[23].mxu1 }
 0x96a   : > { %v2179_v36 = vpop.f32.mrb[24].mxu1 }
 0x96b   : > { %v3158_v37 = vpop.f32.mrb[25].mxu1  ;;  %v2186_v38 = vsel %vm1044_vm3, %v2179_v36, -inf }
 0x96c   : > { %2187 = vmax.xlane.f32.xlu1 %v2186_v38 }
 0x97d   : > { %2281 = vrot.lane.b32.xlu1 %v3706_v59, %s3400_s20 }
 0x981   : > { %3243 = vrot.lane.b32.xlu1 %v3242_v8, %s3401_s17  ;;  %v3264_v8 = vld [vmem:[%s3585_s6 + $0x8] sm:$0xff]  }
 0x99b   : > { %v1947_v39 = vpop.f32.mrb[10].mxu0 }
 0x99c   : > { %v3247_v40 = vpack.i.bf16 %v2023_v34, %v1947_v39  ;;  %v3143_v41 = vpop.f32.mrb[11].mxu0 }
 0x99e   : > { %3248 = vrot.lane.b32.xlu1 %v3247_v40, %s3402_s25 }
 0x99f   : > { %v2101_v42 = vpop.f32.mrb[12].mxu0 }
 0x9a0   : > { %v3153_v43 = vpop.f32.mrb[13].mxu0  ;;  %v2183_v44 = vsel %vm1044_vm3, %v2101_v42, -inf }
 0x9a1   : > { %2184 = vmax.xlane.f32.xlu0 %v2183_v44  ;;  %v3265_v44 = vld [vmem:[%s3602_s30] sm:$0xff]  }
 0x9f9   : > { %v2188_v45 = vpop.xlane.xlu1 %2187 }
 0x9fa   : > { %v2190_v46 = vsub.f32 %v2179_v36, %v2188_v45  ;;  %v3266_v45 = vld [vmem:[%s3602_s30 + $0x8] sm:$0xff]  }
 0x9fc   : > { %v2193_v48 = vmul.f32 1.442695, %v2190_v46 }
 0x9fd   : > { %v2282_v49 = vpop.permute.xlu1 %2281 }
 0x9fe   : > { %3303 = vpow2.f32 %v2193_v48  ;;  %3165 = vmatpush3.msra.mxu1 %v2282_v49 }
 0x9ff   : > { %3177 = vmatprep.subr.bf16.mxu1 %v3396_v17 }
 0xa01   : > { %v3244_v12 = vpop.permute.xlu1 %3243 }
 0xa02   : > { %v3246_v14 = vunpack.i.h.bf16 %v3244_v12  ;;  %v3245_v15 = vunpack.i.l.bf16 %v3244_v12  ;;  %v3274_v12 = vld [vmem:[%s3612_s4 + $0x38] sm:$0xff]  }
 0xa04   : > { %v2382_v54 = vsel %vm1044_vm3, %v3745_v31, %v3246_v14  ;;  %v2381_v18 = vsel %vm1044_vm3, %v3743_v29, %v3245_v15  ;;  %v2977_v31 = vld [vmem:[%s3997_s27] ss:$0 sm:$0xff] }
 0xa08   : > { %v3304_v59 = vpop.eup %3303 }
 0xa09   : > { %v2198_v50 = vsel %vm1044_vm3, %v3304_v59, 0.0 }
 0xa0a   : > { %2199 = vadd.xlane.f32.xlu0 %v2198_v50 }
 0xa10   : > { %v3249_v13 = vpop.permute.xlu1 %3248 }
 0xa11   : > { %v3251_v16 = vunpack.i.h.bf16 %v3249_v13  ;;  %v3250_v47 = vunpack.i.l.bf16 %v3249_v13  ;;  %v2983_v13 = vld [vmem:[%s781_s29] ss:$0 sm:$0xff] }
 0xa13   : > { %v2384_v21 = vsel %vm2383_vm4, %v2381_v18, %v3250_v47  ;;  %v2385_v22 = vsel %vm2383_vm4, %v2382_v54, %v3251_v16 }
 0xa2e   : > { %v2185_v53 = vpop.xlane.xlu0 %2184 }
 0xa2f   : > { %v2189_v55 = vsub.f32 %v2101_v42, %v2185_v53 }
 0xa31   : > { %v2191_v57 = vmul.f32 1.442695, %v2189_v55 }
 0xa33   : > { %3305 = vpow2.f32 %v2191_v57 }
 0xa3d   : > { %v3306_v58 = vpop.eup %3305 }
 0xa3e   : > { %v2195_v60 = vsel %vm1044_vm3, %v3306_v58, 0.0 }
 0xa3f   : > { %2196 = vadd.xlane.f32.xlu0 %v2195_v60 }
 0xa55   : > { %2205 = vrot.lane.b32.xlu0 %v3702_v56, %s3400_s20  ;;  %v3263_v56 = vld [vmem:[%s3585_s6] sm:$0xff]  }
 0xa97   : > { %v2200_v61 = vpop.xlane.xlu0 %2199 }
 0xa98   : > { %3307 = vrcp.f32 %v2200_v61 }
 0xaa2   : > { %v3308_v62 = vpop.eup %3307 }
 0xaa3   : > { %v2204_v63 = vmul.f32 %v3308_v62, %v3304_v59 }
 0xaa5   : > { %3167 = vmatmul.mubr.msk.f32.vlgmr.msra.gmra.mrb[26].mxu1 %vm1044_vm3, %v2204_v63  ;;  %v2982_v63 = vld [vmem:[%s773_s22] ss:$0 sm:$0xff] }
 0xaa6   : > { %3181 = vmatprep.mubr.msk.bf16.mxu1 %vm3397_vm2, %v3396_v17  ;;  %3178 = vmatpush3.bf16.msra.mxu1 %v3265_v44 }
 0xaa7   : > { %3179 = vmatprep.subr.bf16.mxu1 %v3396_v17 }
 0xaaa   : > { %3180 = vmatpush3.bf16.msra.mxu1 %v3266_v45 }
 0xacc   : > { %v2197_v0 = vpop.xlane.xlu0 %2196 }
 0xacd   : > { %3309 = vrcp.f32 %v2197_v0 }
 0xad0   : > { %v2206_v1 = vpop.permute.xlu0 %2205 }
 0xad1   : > { %3160 = vmatpush3.msra.mxu0 %v2206_v1 }
 0xad2   : > { %3169 = vmatprep.subr.bf16.mxu0 %v3396_v17 }
 0xad7   : > { %v3310_v4 = vpop.eup %3309 }
 0xad8   : > { %v2203_v5 = vmul.f32 %v3310_v4, %v3306_v58  ;;  %v2981_v58 = vld [vmem:[%s770_s5] ss:$0 sm:$0xff] }
 0xada   : > { %3162 = vmatmul.mubr.msk.f32.vlgmr.msra.gmra.mrb[14].mxu0 %vm1044_vm3, %v2203_v5 }
 0xadb   : > { %3173 = vmatprep.mubr.msk.bf16.mxu0 %vm3397_vm2, %v3396_v17  ;;  %3170 = vmatpush3.bf16.msra.mxu0 %v3263_v56  ;;  %v3267_v56 = vld [vmem:[%s3612_s4] sm:$0xff]  }
 0xadc   : > { %3171 = vmatprep.subr.bf16.mxu0 %v3396_v17 }
 0xadf   : > { %3172 = vmatpush3.bf16.msra.mxu0 %v3264_v8  ;;  %v3270_v8 = vld [vmem:[%s3612_s4 + $0x18] sm:$0xff]  }
 0xae0   : > { %3185 = vmatprep.subr.bf16.mxu0 %v3396_v17 }
 0xb78   : > { %v2353_v6 = vpop.f32.mrb[26].mxu1 }
 0xb79   : > { %v3168_v7 = vpop.f32.mrb[27].mxu1 }
 0xb7a   : > { %v3269_v7 = vld [vmem:[%s3612_s4 + $0x10] sm:$0xff]  }
 0xbad   : > { %v2277_v9 = vpop.f32.mrb[14].mxu0 }
 0xbae   : > { %v3252_v10 = vpack.i.bf16 %v2353_v6, %v2277_v9  ;;  %v3163_v11 = vpop.f32.mrb[15].mxu0  ;;  %v3268_v6 = vld [vmem:[%s3612_s4 + $0x8] sm:$0xff]   ;;  %v3271_v9 = vld [vmem:[%s3612_s4 + $0x20] sm:$0xff]  }
 0xbaf   : > { %v3273_v11 = vld [vmem:[%s3612_s4 + $0x30] sm:$0xff]  }
 0xbb0   : > { %3253 = vrot.lane.b32.xlu0 %v3252_v10, %s3403_s28  ;;  %v3272_v10 = vld [vmem:[%s3612_s4 + $0x28] sm:$0xff]  }
 0xc22   : > { %v3254_v52 = vpop.permute.xlu0 %3253 }
 0xc23   : > { %v3256_v19 = vunpack.i.h.bf16 %v3254_v52  ;;  %v3255_v20 = vunpack.i.l.bf16 %v3254_v52 }
 0xc25   : > { %v2388_v23 = vsel %vm2386_vm5, %v2385_v22, %v3256_v19  ;;  %v2387_v24 = vsel %vm2386_vm5, %v2384_v21, %v3255_v20 }
 0xc26   : > { %v2389_v25 = vpack.c.bf16 %v2388_v23, %v2387_v24 }
 0xc28   : > { %3174 = vmatmul.mubr.msk.bf16.vlgmr.msra.gmra.mrb[16].mxu0 %vm804_vm1, %v2389_v25 }
 0xc29   : > { %3201 = vmatprep.mubr.msk.bf16.mxu0 %vm3397_vm2, %v3396_v17  ;;  %3186 = vmatpush3.bf16.msra.mxu0 %v3267_v56 }
 0xc2a   : > { %3187 = vmatprep.subr.bf16.mxu0 %v3396_v17 }
 0xc2d   : > { %3188 = vmatpush3.bf16.msra.mxu0 %v3268_v6 }
 0xc2e   : > { %3189 = vmatprep.subr.bf16.mxu0 %v3396_v17 }
 0xc31   : > { %3190 = vmatpush3.bf16.msra.mxu0 %v3269_v7 }
 0xc32   : > { %3191 = vmatprep.subr.bf16.mxu0 %v3396_v17 }
 0xc35   : > { %3192 = vmatpush3.bf16.msra.mxu0 %v3270_v8 }
 0xc36   : > { %3193 = vmatprep.subr.bf16.mxu0 %v3396_v17 }
 0xc39   : > { %3194 = vmatpush3.bf16.msra.mxu0 %v3271_v9 }
 0xc3a   : > { %3195 = vmatprep.subr.bf16.mxu0 %v3396_v17 }
 0xc3d   : > { %3196 = vmatpush3.bf16.msra.mxu0 %v3272_v10 }
 0xc3e   : > { %3197 = vmatprep.subr.bf16.mxu0 %v3396_v17 }
 0xc41   : > { %3198 = vmatpush3.bf16.msra.mxu0 %v3273_v11 }
 0xc42   : > { %3199 = vmatprep.subr.bf16.mxu0 %v3396_v17 }
 0xc45   : > { %3200 = vmatpush3.bf16.msra.mxu0 %v3274_v12 }
 0xcfb   : > { %v2450_v26 = vpop.f32.mrb[16].mxu0 }
 0xcfc   : > { %v2451_v27 = vadd.f32 %v2977_v31, %v2450_v26  ;;  %v3175_v29 = vpop.f32.mrb[17].mxu0 }
 0xcfd   : > { %v2453_v51 = vpop.f32.mrb[18].mxu0 }
 0xcfe   : > { %v3851_v28 = vadd.f32 %v2451_v27, %v3620_v2  ;;  %v2454_v30 = vadd.f32 %v2977_v31, %v2453_v51  ;;  %v3176_v32 = vpop.f32.mrb[19].mxu0  ;;  %v2989_v51 = vld [vmem:[%s789_s2] ss:$0 sm:$0xff] }
 0xd00   : > { %v3854_v33 = vadd.f32 %v2454_v30, %v3622_v3  ;;  %v2461_v34 = vsel %vm804_vm1, %v3851_v28, 0.0 }
 0xd01   : > { %2462 = vadd.xlane.f32.xlu1 %v2461_v34 }
 0xd02   : > { %v2464_v35 = vsel %vm804_vm1, %v3854_v33, 0.0 }
 0xd03   : > { %2465 = vadd.xlane.f32.xlu0 %v2464_v35 }
 0xd8e   : > { %v2463_v36 = vpop.xlane.xlu1 %2462 }
 0xd8f   : > { %v2467_v37 = vmul.f32 0.03125, %v2463_v36 }
 0xd90   : > { %v2466_v38 = vpop.xlane.xlu0 %2465 }
 0xd91   : > { %v2469_v2 = vsub.f32 %v3851_v28, %v2467_v37  ;;  %v2468_v39 = vmul.f32 0.03125, %v2466_v38 }
 0xd93   : > { %v2470_v40 = vsub.f32 %v3854_v33, %v2468_v39  ;;  %v2471_v3 = vmul.f32 %v2469_v2, %v2469_v2 }
 0xd95   : > { %v2473_v41 = vsel %vm804_vm1, %v2471_v3, 0.0  ;;  %v2472_v42 = vmul.f32 %v2470_v40, %v2470_v40 }
 0xd96   : > { %2474 = vadd.xlane.f32.xlu0 %v2473_v41 }
 0xd97   : > { %v2476_v43 = vsel %vm804_vm1, %v2472_v42, 0.0 }
 0xd9a   : > { %2477 = vadd.xlane.f32.xlu0 %v2476_v43 }
 0xe23   : > { %v2475_v46 = vpop.xlane.xlu0 %2474 }
 0xe24   : > { %v2479_v48 = vmul.f32 0.03125, %v2475_v46 }
 0xe26   : > { %v2481_v49 = vadd.f32 1e-05, %v2479_v48 }
 0xe27   : > { %v2478_v59 = vpop.xlane.xlu0 %2477 }
 0xe28   : > { %3311 = vrsqrt.f32 %v2481_v49  ;;  %v2480_v50 = vmul.f32 0.03125, %v2478_v59 }
 0xe2a   : > { %v2482_v53 = vadd.f32 1e-05, %v2480_v50 }
 0xe2c   : > { %3313 = vrsqrt.f32 %v2482_v53 }
 0xe32   : > { %v3312_v55 = vpop.eup %3311 }
 0xe33   : > { %v2485_v57 = vmul.f32 %v3312_v55, %v2469_v2 }
 0xe35   : > { %v2493_v61 = vmul.f32 %v2981_v58, %v2485_v57 }
 0xe36   : > { %v3314_v60 = vpop.eup %3313 }
 0xe37   : > { %v2486_v62 = vmul.f32 %v3314_v60, %v2470_v40  ;;  %v2501_v1 = vadd.f32 %v2982_v63, %v2493_v61 }
 0xe39   : > { %v2494_v0 = vmul.f32 %v2981_v58, %v2486_v62 }
 0xe3b   : > { %v2502_v4 = vadd.f32 %v2982_v63, %v2494_v0 }
 0xe3d   : > { %v2503_v5 = vpack.c.bf16 %v2502_v4, %v2501_v1 }
 0xe3f   : > { %3182 = vmatmul.mubr.msk.bf16.vlgmr.msra.gmra.mrb[28].mxu1 %vm804_vm1, %v2503_v5 }
 0xf12   : > { %v2564_v14 = vpop.f32.mrb[28].mxu1 }
 0xf13   : > { %v2565_v15 = vadd.f32 %v2983_v13, %v2564_v14  ;;  %v3183_v16 = vpop.f32.mrb[29].mxu1 }
 0xf14   : > { %v2567_v47 = vpop.f32.mrb[30].mxu1 }
 0xf15   : > { %v2987_v52 = vmul.f32 -1.702, %v2565_v15  ;;  %v2568_v54 = vadd.f32 %v2983_v13, %v2567_v47  ;;  %v3184_v18 = vpop.f32.mrb[31].mxu1 }
 0xf17   : > { %v2575_v19 = vmul.f32 1.442695, %v2987_v52  ;;  %v2988_v20 = vmul.f32 -1.702, %v2568_v54 }
 0xf19   : > { %3315 = vpow2.f32 %v2575_v19  ;;  %v2577_v21 = vmul.f32 1.442695, %v2988_v20 }
 0xf1b   : > { %3317 = vpow2.f32 %v2577_v21 }
 0xf23   : > { %v3316_v17 = vpop.eup %3315 }
 0xf24   : > { %v2579_v22 = vadd.f32 1.0, %v3316_v17 }
 0xf25   : > { %v3318_v23 = vpop.eup %3317 }
 0xf26   : > { %3319 = vrcp.f32 %v2579_v22  ;;  %v2580_v24 = vadd.f32 1.0, %v3318_v23 }
 0xf28   : > { %3321 = vrcp.f32 %v2580_v24 }
 0xf30   : > { %v3320_v25 = vpop.eup %3319 }
 0xf31   : > { %v2585_v26 = vmul.f32 %v3320_v25, %v2565_v15 }
 0xf32   : > { %v3322_v31 = vpop.eup %3321 }
 0xf33   : > { %v2586_v27 = vmul.f32 %v3322_v31, %v2568_v54 }
 0xf35   : > { %v2587_v29 = vpack.c.bf16 %v2586_v27, %v2585_v26 }
 0xf37   : > { %3202 = vmatmul.mubr.bf16.vlgmr.msra.gmra.mrb[20].mxu0 %v2587_v29 }
0x100a   : > { %v2693_v30 = vpop.f32.mrb[20].mxu0 }
0x100b   : > { %v2694_v32 = vadd.f32 %v2989_v51, %v2693_v30  ;;  %v3203_v34 = vpop.f32.mrb[21].mxu0  ;;  %2707 = sbr.rel (%p2998_p4) target bundleno = 4114 (0x1012), region = 100 }
0x100c   : > { %v2696_v35 = vpop.f32.mrb[22].mxu0 }
0x100d   : > { %v2700_v36 = vadd.f32 %v2694_v32, %v3851_v28  ;;  %v2697_v37 = vadd.f32 %v2989_v51, %v2696_v35  ;;  %v3204_v38 = vpop.f32.mrb[23].mxu0 }
0x100f   : > { %2702 = vst.msk [vmem:[#allocation2] sm:$0xff] %vm804_vm1, %v2700_v36  ;;  %v2701_v2 = vadd.f32 %v2697_v37, %v3854_v33  ;;  %2708 = vst.msk [vmem:[#allocation6] sm:$0xff] (!%p2998_p4), %vm804_vm1, %v2700_v36 }
0x1011   : > { %2703 = vst.msk [vmem:[#allocation2 + $0x8] sm:$0xff] %vm804_vm1, %v2701_v2  ;;  %2709 = vst.msk [vmem:[#allocation6 + $0x8] sm:$0xff] (!%p2998_p4), %vm804_vm1, %v2701_v2 }
0x1012 PF: > { %s3999_s19 = sld [smem:[#allocation10_spill]]  ;;  %s3404_s2 = smov [#allocation6]  }
0x1013   : > { %s2716_s26 = sshll.u32 %s3404_s2, 4  ;;  %s2717_s26 = int_to_ptr.vmem [resolvable:$true] %s2716_s26 }
0x1014   : > { %s3351_s0 = scalar_lea.vmem %s2717_s26, 256  ;;  %p3358_p13 = scmp.lt.s32.totalorder %s2717_s26, %s2717_s26 }
0x1015   : > { %p3352_p10 = scmp.ne.s32.totalorder %s2717_s26, %s3351_s0  ;;  %p3359_p0 = scmp.lt.s32.totalorder %s3351_s0, %s3351_s0 }
0x1017   : > { %p3360_p1 = por %p3359_p0, %p3358_p13 }
0x1018   : > { %p3219_p6 = scmp.eq.s32.totalorder %s3999_s19, 1 }
0x101a   : > { %p3353_p11 = pnand %p3352_p10, %p3219_p6 }
0x101c   : > { %p3354_p12 = pneg %p3353_p11 }
0x101e   : > { %p3361_p5 = pnand %p3360_p1, %p3354_p12 }
0x1020   : > { %3364 = shalt.err (!%p3361_p5)
}
0x1021   : > { %s4000_s20 = sld [smem:[#allocation19_spill]] }
0x1027   : > { %s3365_s25 = scalar_lea.hbm %s4000_s20, 256 }
0x1028   : > { %p3366_p7 = scmp.ne.s32.totalorder %s4000_s20, %s3365_s25  ;;  %p3371_p2 = scmp.lt.u32.totalorder %s3365_s25, %s4000_s20 }
0x102a   : > { %p3367_p9 = pnand %p3366_p7, %p3219_p6 }
0x102c   : > { %p3368_p8 = pneg %p3367_p9 }
0x102e   : > { %p3373_p3 = pnand %p3371_p2, %p3368_p8 }
0x1030   : > { %3376 = shalt.err (!%p3373_p3)
}
0x1031   : > { %s3405_s21 = smov 128  }
0x1032   : > { %3210 = dma.vmem_to_hbm [thread:$0]  (%p3219_p6), %s2717_s26, 256, %s4000_s20, [#allocation5], %s3405_s21, %s3405_s21, %s3401_s17  }
0x1033   : > { %3386 = dma.done.wait (%p3219_p6), [#allocation5], 256  }
0x1034   : > { %3388 = vsyncadd (%p3219_p6), [#allocation5], 4294967040 }
0x1035 PF: > { %s4001_s9 = sld [smem:[#allocation9_spill]] }
0x103b   : > { %s29_s24 = sadd.s32 1, %s4001_s9  }
0x103c   : > { %p26_p4 = scmp.ge.s32.totalorder %s29_s24, 4  }
0x103e   :  { %28 = sbr.rel (!%p26_p4) target bundleno = 12 (0xc), region = 173 }
0x1045   :  { %2732 = vsyncpa [#allocation4], 1 }
0x1046   :  { %2734 = vsyncpa [#allocation4 + $0x1], 1 }
0x1047   :  { %2735 = vsyncpa [#allocation5], 1 }
0x1048   :  { %2737 = vsyncpa [#allocation5 + $0x1], 1 }

</bundles_post_ra>
